<compile_context>
chip_gen: v7x
topology: tpu7x:2x2x1
jax: 0.10.0
libtpu: 0.0.40
codegen_flags: <defaults>
</compile_context>

<pallas_src>
import jax
import jax.numpy as jnp
import numpy as np
from jax.experimental import pallas as pl
from jax.experimental.pallas import tpu as pltpu


# ----------------------------- Pallas kernel -----------------------------

def _leaky_relu(x, slope=0.2):
    return jnp.where(x > 0, x, slope * x)


def generator_mlp_kernel(ximg_ref, xemb_ref,
                         w1i_ref, w1e_ref, b1_ref,
                         w2_ref, b2_ref,
                         w3_ref, b3_ref,
                         w4_ref, b4_ref,
                         o_ref):
    """MLP: Linear(in,512) -> LReLU -> Linear(512,256) -> [Dropout=id] -> LReLU
            -> Linear(256,128) -> [Dropout=id] -> LReLU -> Linear(128,1) -> Sigmoid.

    ximg_ref: (TB, C*H*W) f32 tile, xemb_ref: (TB, label_dim) f32 tile.
    Weights (bf16) / biases (f32) are VMEM-resident across all grid steps.
    Output o_ref is a lane-dense (1, TB) f32 row block."""
    # ---- Layer 1: split matmul (image part K=1024, embedding part K=label_dim)
    # Inputs arrive f32 (no extra wrapper-side HBM conversion pass); cast to
    # bf16 immediately before the MXU dot, accumulate in f32.
    ximg = ximg_ref[...].astype(jnp.bfloat16)
    xemb = xemb_ref[...].astype(jnp.bfloat16)
    h = jnp.dot(ximg, w1i_ref[...], preferred_element_type=jnp.float32)
    h += jnp.dot(xemb, w1e_ref[...], preferred_element_type=jnp.float32)
    h += b1_ref[...]
    h = _leaky_relu(h)

    # ---- Layer 2  (Dropout(0.4) -> identity at inference)
    h = jnp.dot(h.astype(jnp.bfloat16), w2_ref[...],
                preferred_element_type=jnp.float32) + b2_ref[...]
    h = _leaky_relu(h)

    # ---- Layer 3  (Dropout(0.4) -> identity at inference)
    h = jnp.dot(h.astype(jnp.bfloat16), w3_ref[...],
                preferred_element_type=jnp.float32) + b3_ref[...]
    h = _leaky_relu(h)

    # ---- Layer 4: N=1 output -> VPU multiply + lane reduction (skip the MXU)
    w4 = w4_ref[...].astype(jnp.float32)               # (1, 128)
    logit = jnp.sum(h * w4, axis=-1) + b4_ref[0]       # (TB,)

    # ---- Stable sigmoid: exp on EUP, approx reciprocal on the EUP vrcp slot
    e = jnp.exp(-jnp.abs(logit))
    r = pl.reciprocal(1.0 + e, approx=True)
    sig = jnp.where(logit >= 0, r, e * r)

    o_ref[...] = sig[None, :]                          # lane-dense (1, TB) store


# ------------------------------- Wrapper ---------------------------------

def _round_up(x, m):
    return ((x + m - 1) // m) * m


def _pick_batch_tile(B, max_tile=1024):
    """Batch tile choice.

    * Always a multiple of 16 (bf16 sublane packing, no masked stores).
    * Small batches: one tile, grid=(1,).
    * Large batches: multiple-of-256 tiles (full MXU M-passes) sized to half
      the padded batch so the 'parallel' grid has >= 2 steps and both v7x
      TensorCores stay busy; capped at max_tile."""
    b16 = _round_up(B, 16)
    if b16 <= 512:
        return min(max_tile, b16)
    half = -(-b16 // 2)
    return min(max_tile, _round_up(half, 256))


def generator_forward(img, label, params, *, max_tile=1024):
    """img: (B, C, H, W) float32, label: (B,) int32 -> (B, 1) float32."""
    B = img.shape[0]

    # Glue: flatten image (matches torch .view) and embedding lookup.
    # NOTE: no f32->bf16 conversion here -- the cast happens in-kernel, so the
    # dominant image tensor makes a single HBM pass into VMEM.
    img_flat = img.reshape(B, -1)                          # (B, C*H*W) f32
    emb = jnp.take(params["embedding"], label, axis=0)     # (B, label_dim) f32

    k_img = img_flat.shape[1]
    label_dim = emb.shape[1]

    tb = _pick_batch_tile(B, max_tile)
    b_pad = _round_up(B, tb)
    grid = (b_pad // tb,)
    if b_pad != B:
        pad = ((0, b_pad - B), (0, 0))
        img_flat = jnp.pad(img_flat, pad)
        emb = jnp.pad(emb, pad)

    def resident(a):  # weight/bias stays in VMEM across all grid steps
        return pl.BlockSpec(a.shape, lambda i: (0, 0))

    # Advisory cost estimate so XLA schedules the surrounding gather/pad ops
    # sensibly around the custom call.
    weight_bytes = sum(
        int(np.prod(params[k].shape)) * params[k].dtype.itemsize
        for k in ("w1_img", "w1_emb", "b1", "w2", "b2", "w3", "b3", "w4", "b4"))
    in_dim = k_img + label_dim
    flops = 2 * b_pad * (in_dim * 512 + 512 * 256 + 256 * 128 + 128)
    bytes_accessed = b_pad * (k_img + label_dim + 1) * 4 + weight_bytes
    cost = pl.CostEstimate(flops=flops, transcendentals=b_pad,
                           bytes_accessed=bytes_accessed)

    out = pl.pallas_call(
        generator_mlp_kernel,
        out_shape=jax.ShapeDtypeStruct((1, b_pad), jnp.float32),
        grid=grid,
        in_specs=[
            pl.BlockSpec((tb, k_img), lambda i: (i, 0)),      # image tile (f32)
            pl.BlockSpec((tb, label_dim), lambda i: (i, 0)),  # embedding tile
            resident(params["w1_img"]),
            resident(params["w1_emb"]),
            resident(params["b1"]),
            resident(params["w2"]),
            resident(params["b2"]),
            resident(params["w3"]),
            resident(params["b3"]),
            resident(params["w4"]),
            pl.BlockSpec(memory_space=pltpu.MemorySpace.SMEM),  # b4 scalar
        ],
        out_specs=pl.BlockSpec((1, tb), lambda i: (0, i)),
        compiler_params=pltpu.CompilerParams(
            dimension_semantics=("parallel",),
            vmem_limit_bytes=32 * 1024 * 1024),
        cost_estimate=cost,
    )(
        img_flat, emb,
        params["w1_img"], params["w1_emb"], params["b1"],
        params["w2"], params["b2"],
        params["w3"], params["b3"],
        params["w4"], params["b4"],
    )
    return out[0, :B].reshape(B, 1)


# --------------------------- Parameter setup ------------------------------

def init_params(key, n_classes, label_dim, channels, img_size):
    k_img = channels * img_size * img_size
    in_dim = label_dim + k_img
    keys = jax.random.split(key, 10)

    def uniform(k, shape, fan_in):
        # PyTorch Linear default init: U(-1/sqrt(fan_in), 1/sqrt(fan_in))
        bound = 1.0 / np.sqrt(fan_in)
        return jax.random.uniform(k, shape, jnp.float32, -bound, bound)

    return {
        "embedding": jax.random.normal(keys[0], (n_classes, label_dim),
                                       dtype=jnp.float32),
        # Layer-1 weight split: image part (K=1024-aligned) + embedding part.
        "w1_img": uniform(keys[1], (k_img, 512), in_dim).astype(jnp.bfloat16),
        "w1_emb": uniform(keys[2], (label_dim, 512), in_dim).astype(jnp.bfloat16),
        "b1": uniform(keys[3], (1, 512), in_dim),
        "w2": uniform(keys[4], (512, 256), 512).astype(jnp.bfloat16),
        "b2": uniform(keys[5], (1, 256), 512),
        "w3": uniform(keys[6], (256, 128), 256).astype(jnp.bfloat16),
        "b3": uniform(keys[7], (1, 128), 256),
        # Final layer stored as a (1, 128) row for the VPU reduce path.
        "w4": uniform(keys[8], (1, 128), 128).astype(jnp.bfloat16),
        "b4": uniform(keys[9], (1,), 128),
    }


# --------------------------- Reference (JAX) ------------------------------

def generator_forward_ref(img, label, params):
    """Pure-JAX reference using the same bf16 weights / bf16 activations."""
    B = img.shape[0]
    x = img.reshape(B, -1).astype(jnp.bfloat16)
    emb = jnp.take(params["embedding"], label, axis=0).astype(jnp.bfloat16)
    d_in = jnp.concatenate([x, emb], axis=-1)
    w1 = jnp.concatenate([params["w1_img"], params["w1_emb"]], axis=0)

    def lrelu(v):
        return jnp.where(v > 0, v, 0.2 * v)

    h = lrelu(jnp.dot(d_in, w1, preferred_element_type=jnp.float32)
              + params["b1"])
    h = lrelu(jnp.dot(h.astype(jnp.bfloat16), params["w2"],
                      preferred_element_type=jnp.float32) + params["b2"])
    h = lrelu(jnp.dot(h.astype(jnp.bfloat16), params["w3"],
                      preferred_element_type=jnp.float32) + params["b3"])
    logit = (h * params["w4"].astype(jnp.float32)).sum(-1, keepdims=True) \
        + params["b4"]
    return jax.nn.sigmoid(logit)


# ------------------------------- Main --------------------------------------

if __name__ == "__main__":
    # Small, deterministic config consistent with the module's forward:
    n_classes, label_dim = 10, 8
    channels, img_size = 4, 16
    batch = 2

    key = jax.random.PRNGKey(0)
    k_params, k_img, k_lab = jax.random.split(key, 3)

    params = init_params(k_params, n_classes, label_dim, channels, img_size)
    img = jax.random.normal(k_img, (batch, channels, img_size, img_size),
                            dtype=jnp.float32)
    label = jax.random.randint(k_lab, (batch,), 0, n_classes, dtype=jnp.int32)

    out = jax.block_until_ready(generator_forward(img, label, params))
    ref = jax.block_until_ready(generator_forward_ref(img, label, params))

    assert out.shape == (batch, 1)
    # Tolerance reflects bf16 weights/activations (shared with the reference)
    # plus the approx EUP reciprocal in the sigmoid epilogue.
    np.testing.assert_allclose(np.asarray(out), np.asarray(ref),
                               rtol=2e-3, atol=2e-3)
    print("KERNEL_OK")
</pallas_src>

<mosaic_0001>
module attributes {stable_mosaic.version = 11 : i64} {
  func.func @generator_mlp_kernel(%arg0: i32, %arg1: memref<16x1024xf32, #tpu.memory_space<vmem>>, %arg2: memref<16x8xf32, #tpu.memory_space<vmem>>, %arg3: memref<1024x512xbf16, #tpu.memory_space<vmem>>, %arg4: memref<8x512xbf16, #tpu.memory_space<vmem>>, %arg5: memref<1x512xf32, #tpu.memory_space<vmem>>, %arg6: memref<512x256xbf16, #tpu.memory_space<vmem>>, %arg7: memref<1x256xf32, #tpu.memory_space<vmem>>, %arg8: memref<256x128xbf16, #tpu.memory_space<vmem>>, %arg9: memref<1x128xf32, #tpu.memory_space<vmem>>, %arg10: memref<1x128xbf16, #tpu.memory_space<vmem>>, %arg11: memref<1xf32, #tpu.memory_space<smem>>, %arg12: memref<1x16xf32, #tpu.memory_space<vmem>>) attributes {dimension_semantics = [#tpu.dimension_semantics<parallel>], iteration_bounds = array<i64: 1>, scalar_prefetch = 0 : i64, scratch_operands = 0 : i64, tpu.core_type = #tpu.core_type<tc>, window_params = [{transform_indices = @transform_0, window_bounds = array<i64: 16, 1024>}, {transform_indices = @transform_1, window_bounds = array<i64: 16, 8>}, {pipeline_mode = #tpu.pipeline_mode<synchronous>, transform_indices = @transform_2, window_bounds = array<i64: 1024, 512>}, {pipeline_mode = #tpu.pipeline_mode<synchronous>, transform_indices = @transform_3, window_bounds = array<i64: 8, 512>}, {pipeline_mode = #tpu.pipeline_mode<synchronous>, transform_indices = @transform_4, window_bounds = array<i64: 1, 512>}, {pipeline_mode = #tpu.pipeline_mode<synchronous>, transform_indices = @transform_5, window_bounds = array<i64: 512, 256>}, {pipeline_mode = #tpu.pipeline_mode<synchronous>, transform_indices = @transform_6, window_bounds = array<i64: 1, 256>}, {pipeline_mode = #tpu.pipeline_mode<synchronous>, transform_indices = @transform_7, window_bounds = array<i64: 256, 128>}, {pipeline_mode = #tpu.pipeline_mode<synchronous>, transform_indices = @transform_8, window_bounds = array<i64: 1, 128>}, {pipeline_mode = #tpu.pipeline_mode<synchronous>, transform_indices = @transform_9, window_bounds = array<i64: 1, 128>}, {transform_indices = @transform_10, window_bounds = array<i64: 1>}, {transform_indices = @transform_11, window_bounds = array<i64: 1, 16>}]} {
    %c0 = arith.constant 0 : index
    %c0_0 = arith.constant 0 : index
    %0 = vector.load %arg1[%c0, %c0_0] : memref<16x1024xf32, #tpu.memory_space<vmem>>, vector<16x1024xf32>
    %1 = arith.truncf %0 : vector<16x1024xf32> to vector<16x1024xbf16>
    %c0_1 = arith.constant 0 : index
    %c0_2 = arith.constant 0 : index
    %2 = vector.load %arg2[%c0_1, %c0_2] : memref<16x8xf32, #tpu.memory_space<vmem>>, vector<16x8xf32>
    %3 = arith.truncf %2 : vector<16x8xf32> to vector<16x8xbf16>
    %c0_3 = arith.constant 0 : index
    %c0_4 = arith.constant 0 : index
    %4 = vector.load %arg3[%c0_3, %c0_4] : memref<1024x512xbf16, #tpu.memory_space<vmem>>, vector<1024x512xbf16>
    %cst = arith.constant dense<0.000000e+00> : vector<16x512xf32>
    %5 = tpu.matmul %1, %4, %cst {dimension_numbers = #tpu.dot_dimension_numbers<[1], [0], [0], [1], [0, 0, 1, 1], [], []>} : vector<16x1024xbf16>, vector<1024x512xbf16>, vector<16x512xf32> -> vector<16x512xf32>
    %c0_5 = arith.constant 0 : index
    %c0_6 = arith.constant 0 : index
    %6 = vector.load %arg4[%c0_5, %c0_6] : memref<8x512xbf16, #tpu.memory_space<vmem>>, vector<8x512xbf16>
    %cst_7 = arith.constant dense<0.000000e+00> : vector<16x512xf32>
    %7 = tpu.matmul %3, %6, %cst_7 {dimension_numbers = #tpu.dot_dimension_numbers<[1], [0], [0], [1], [0, 0, 1, 1], [], []>} : vector<16x8xbf16>, vector<8x512xbf16>, vector<16x512xf32> -> vector<16x512xf32>
    %8 = arith.addf %5, %7 : vector<16x512xf32>
    %c0_8 = arith.constant 0 : index
    %c0_9 = arith.constant 0 : index
    %9 = vector.load %arg5[%c0_8, %c0_9] : memref<1x512xf32, #tpu.memory_space<vmem>>, vector<1x512xf32>
    %10 = vector.broadcast %9 : vector<1x512xf32> to vector<16x512xf32>
    %11 = arith.addf %8, %10 : vector<16x512xf32>
    %cst_10 = arith.constant 0.000000e+00 : f32
    %12 = vector.broadcast %cst_10 : f32 to vector<16x512xf32>
    %13 = arith.cmpf ogt, %11, %12 : vector<16x512xf32>
    %cst_11 = arith.constant 2.000000e-01 : f32
    %14 = vector.broadcast %cst_11 : f32 to vector<16x512xf32>
    %15 = arith.mulf %14, %11 : vector<16x512xf32>
    %16 = arith.select %13, %11, %15 : vector<16x512xi1>, vector<16x512xf32>
    %17 = arith.truncf %16 : vector<16x512xf32> to vector<16x512xbf16>
    %c0_12 = arith.constant 0 : index
    %c0_13 = arith.constant 0 : index
    %18 = vector.load %arg6[%c0_12, %c0_13] : memref<512x256xbf16, #tpu.memory_space<vmem>>, vector<512x256xbf16>
    %cst_14 = arith.constant dense<0.000000e+00> : vector<16x256xf32>
    %19 = tpu.matmul %17, %18, %cst_14 {dimension_numbers = #tpu.dot_dimension_numbers<[1], [0], [0], [1], [0, 0, 1, 1], [], []>} : vector<16x512xbf16>, vector<512x256xbf16>, vector<16x256xf32> -> vector<16x256xf32>
    %c0_15 = arith.constant 0 : index
    %c0_16 = arith.constant 0 : index
    %20 = vector.load %arg7[%c0_15, %c0_16] : memref<1x256xf32, #tpu.memory_space<vmem>>, vector<1x256xf32>
    %21 = vector.broadcast %20 : vector<1x256xf32> to vector<16x256xf32>
    %22 = arith.addf %19, %21 : vector<16x256xf32>
    %cst_17 = arith.constant 0.000000e+00 : f32
    %23 = vector.broadcast %cst_17 : f32 to vector<16x256xf32>
    %24 = arith.cmpf ogt, %22, %23 : vector<16x256xf32>
    %cst_18 = arith.constant 2.000000e-01 : f32
    %25 = vector.broadcast %cst_18 : f32 to vector<16x256xf32>
    %26 = arith.mulf %25, %22 : vector<16x256xf32>
    %27 = arith.select %24, %22, %26 : vector<16x256xi1>, vector<16x256xf32>
    %28 = arith.truncf %27 : vector<16x256xf32> to vector<16x256xbf16>
    %c0_19 = arith.constant 0 : index
    %c0_20 = arith.constant 0 : index
    %29 = vector.load %arg8[%c0_19, %c0_20] : memref<256x128xbf16, #tpu.memory_space<vmem>>, vector<256x128xbf16>
    %cst_21 = arith.constant dense<0.000000e+00> : vector<16x128xf32>
    %30 = tpu.matmul %28, %29, %cst_21 {dimension_numbers = #tpu.dot_dimension_numbers<[1], [0], [0], [1], [0, 0, 1, 1], [], []>} : vector<16x256xbf16>, vector<256x128xbf16>, vector<16x128xf32> -> vector<16x128xf32>
    %c0_22 = arith.constant 0 : index
    %c0_23 = arith.constant 0 : index
    %31 = vector.load %arg9[%c0_22, %c0_23] : memref<1x128xf32, #tpu.memory_space<vmem>>, vector<1x128xf32>
    %32 = vector.broadcast %31 : vector<1x128xf32> to vector<16x128xf32>
    %33 = arith.addf %30, %32 : vector<16x128xf32>
    %cst_24 = arith.constant 0.000000e+00 : f32
    %34 = vector.broadcast %cst_24 : f32 to vector<16x128xf32>
    %35 = arith.cmpf ogt, %33, %34 : vector<16x128xf32>
    %cst_25 = arith.constant 2.000000e-01 : f32
    %36 = vector.broadcast %cst_25 : f32 to vector<16x128xf32>
    %37 = arith.mulf %36, %33 : vector<16x128xf32>
    %38 = arith.select %35, %33, %37 : vector<16x128xi1>, vector<16x128xf32>
    %c0_26 = arith.constant 0 : index
    %c0_27 = arith.constant 0 : index
    %39 = vector.load %arg10[%c0_26, %c0_27] : memref<1x128xbf16, #tpu.memory_space<vmem>>, vector<1x128xbf16>
    %40 = arith.extf %39 : vector<1x128xbf16> to vector<1x128xf32>
    %41 = vector.broadcast %40 : vector<1x128xf32> to vector<16x128xf32>
    %42 = arith.mulf %38, %41 : vector<16x128xf32>
    %cst_28 = arith.constant dense<0.000000e+00> : vector<16xf32>
    %43 = vector.multi_reduction <add>, %42, %cst_28 [1] : vector<16x128xf32> to vector<16xf32>
    %c0_29 = arith.constant 0 : index
    %44 = memref.load %arg11[%c0_29] : memref<1xf32, #tpu.memory_space<smem>>
    %45 = vector.broadcast %44 : f32 to vector<16xf32>
    %46 = arith.addf %43, %45 : vector<16xf32>
    %47 = math.absf %46 : vector<16xf32>
    %cst_30 = arith.constant 0.000000e+00 : f32
    %48 = vector.broadcast %cst_30 : f32 to vector<16xf32>
    %49 = arith.subf %48, %47 : vector<16xf32>
    %50 = math.exp %49 : vector<16xf32>
    %cst_31 = arith.constant 1.000000e+00 : f32
    %51 = vector.broadcast %cst_31 : f32 to vector<16xf32>
    %52 = arith.addf %51, %50 : vector<16xf32>
    %53 = tpu.reciprocal %52 {approx = true} : vector<16xf32> -> vector<16xf32>
    %cst_32 = arith.constant 0.000000e+00 : f32
    %54 = vector.broadcast %cst_32 : f32 to vector<16xf32>
    %55 = arith.cmpf oge, %46, %54 : vector<16xf32>
    %56 = arith.mulf %50, %53 : vector<16xf32>
    %57 = arith.select %55, %53, %56 : vector<16xi1>, vector<16xf32>
    %58 = vector.shape_cast %57 : vector<16xf32> to vector<1x16xf32>
    %c0_33 = arith.constant 0 : index
    %c0_34 = arith.constant 0 : index
    %59 = vector.load %arg12[%c0_33, %c0_34] : memref<1x16xf32, #tpu.memory_space<vmem>>, vector<1x16xf32>
    tpu.vector_store %arg12[%c0_33, %c0_34], %58 {strides = array<i32>} : memref<1x16xf32, #tpu.memory_space<vmem>>, vector<1x16xf32>,
    return
  }
  func.func @transform_0(%arg0: i32) -> (i32, i32) {
    %c0_i32 = arith.constant 0 : i32
    %c0_i32_0 = arith.constant 0 : i32
    return %arg0, %c0_i32 : i32, i32
  }
  func.func @transform_1(%arg0: i32) -> (i32, i32) {
    %c0_i32 = arith.constant 0 : i32
    %c0_i32_0 = arith.constant 0 : i32
    return %arg0, %c0_i32 : i32, i32
  }
  func.func @transform_2(%arg0: i32) -> (i32, i32) {
    %c0_i32 = arith.constant 0 : i32
    %c0_i32_0 = arith.constant 0 : i32
    %c0_i32_1 = arith.constant 0 : i32
    return %c0_i32, %c0_i32_0 : i32, i32
  }
  func.func @transform_3(%arg0: i32) -> (i32, i32) {
    %c0_i32 = arith.constant 0 : i32
    %c0_i32_0 = arith.constant 0 : i32
    %c0_i32_1 = arith.constant 0 : i32
    return %c0_i32, %c0_i32_0 : i32, i32
  }
  func.func @transform_4(%arg0: i32) -> (i32, i32) {
    %c0_i32 = arith.constant 0 : i32
    %c0_i32_0 = arith.constant 0 : i32
    %c0_i32_1 = arith.constant 0 : i32
    return %c0_i32, %c0_i32_0 : i32, i32
  }
  func.func @transform_5(%arg0: i32) -> (i32, i32) {
    %c0_i32 = arith.constant 0 : i32
    %c0_i32_0 = arith.constant 0 : i32
    %c0_i32_1 = arith.constant 0 : i32
    return %c0_i32, %c0_i32_0 : i32, i32
  }
  func.func @transform_6(%arg0: i32) -> (i32, i32) {
    %c0_i32 = arith.constant 0 : i32
    %c0_i32_0 = arith.constant 0 : i32
    %c0_i32_1 = arith.constant 0 : i32
    return %c0_i32, %c0_i32_0 : i32, i32
  }
  func.func @transform_7(%arg0: i32) -> (i32, i32) {
    %c0_i32 = arith.constant 0 : i32
    %c0_i32_0 = arith.constant 0 : i32
    %c0_i32_1 = arith.constant 0 : i32
    return %c0_i32, %c0_i32_0 : i32, i32
  }
  func.func @transform_8(%arg0: i32) -> (i32, i32) {
    %c0_i32 = arith.constant 0 : i32
    %c0_i32_0 = arith.constant 0 : i32
    %c0_i32_1 = arith.constant 0 : i32
    return %c0_i32, %c0_i32_0 : i32, i32
  }
  func.func @transform_9(%arg0: i32) -> (i32, i32) {
    %c0_i32 = arith.constant 0 : i32
    %c0_i32_0 = arith.constant 0 : i32
    %c0_i32_1 = arith.constant 0 : i32
    return %c0_i32, %c0_i32_0 : i32, i32
  }
  func.func @transform_10(%arg0: i32) -> i32 {
    %c0_i32 = arith.constant 0 : i32
    %c0_i32_0 = arith.constant 0 : i32
    return %c0_i32 : i32
  }
  func.func @transform_11(%arg0: i32) -> (i32, i32) {
    %c0_i32 = arith.constant 0 : i32
    %c0_i32_0 = arith.constant 0 : i32
    return %c0_i32, %arg0 : i32, i32
  }
}

</mosaic_0001>

<bundles_post_ra>
// kernel: tpu_custom_call.1
= control target key start
LH: loop header
LB: loop body
LE: loop exit
PB: predicated region body
PF: predicated region fallthrough
CT: control target
= control target key end

     0   :  { %17 = vsyncpa [#allocation4], 0  ;;  %s4231_s0 = inlined_call_operand.hbm [shape: f32[16,1024], index: 0, kind: input, shape index: {}]   ;;  %s4232_s1 = inlined_call_operand.vmem [shape: f32[16,8], index: 1, kind: input, shape index: {}]   ;;  %s4233_s2 = inlined_call_operand.hbm [shape: bf16[1024,512], index: 2, kind: input, shape index: {}]   ;;  %s4234_s3 = inlined_call_operand.vmem [shape: bf16[8,512], index: 3, kind: input, shape index: {}]   ;;  %s4235_s4 = inlined_call_operand.vmem [shape: f32[1,512], index: 4, kind: input, shape index: {}]   ;;  %s4236_s5 = inlined_call_operand.hbm [shape: bf16[512,256], index: 5, kind: input, shape index: {}]   ;;  %s4237_s6 = inlined_call_operand.vmem [shape: f32[1,256], index: 6, kind: input, shape index: {}]   ;;  %s4238_s7 = inlined_call_operand.hbm [shape: bf16[256,128], index: 7, kind: input, shape index: {}]   ;;  %s4239_s8 = inlined_call_operand.vmem [shape: f32[1,128], index: 8, kind: input, shape index: {}]   ;;  %s4240_s9 = inlined_call_operand.vmem [shape: bf16[1,128], index: 9, kind: input, shape index: {}]   ;;  %s4241_s10 = inlined_call_operand.<no memory space> [shape: f32[1], index: 10, kind: input, shape index: {}]   ;;  %s4242_s11 = inlined_call_operand.hbm [shape: f32[1,16], index: 11, kind: output, shape index: {}]  }
   0x1   :  { %18 = vsyncpa [#allocation7], 0 }
   0x2   :  { %19 = vsyncpa [#allocation10], 0 }
   0x3   :  { %20 = vsyncpa [#allocation5], 0  ;;  %s3969_s17 = smov [#allocation6]   ;;  %s3851_s21 = scalar_lea.hbm %s4233_s2, 32768 }
   0x4   :  { %s40_s18 = sshll.u32 %s3969_s17, 4  ;;  %p3852_p0 = scmp.ne.s32.totalorder %s4233_s2, %s3851_s21  ;;  %s41_s18 = int_to_ptr.vmem [resolvable:$true] %s40_s18 }
   0x5   :  { %p3855_p1 = scmp.lt.u32.totalorder %s3851_s21, %s4233_s2 }
   0x7   :  { %p3857_p2 = pnand %p3855_p1, %p3852_p0 }
   0x9   :  { %3860 = shalt.err (!%p3857_p2)
}
   0xa   :  { %s3861_s26 = scalar_lea.vmem %s41_s18, 32768  ;;  %p3866_p4 = scmp.lt.s32.totalorder %s41_s18, %s41_s18 }
   0xb   :  { %p3862_p3 = scmp.ne.s32.totalorder %s41_s18, %s3861_s26  ;;  %p3867_p5 = scmp.lt.s32.totalorder %s3861_s26, %s3861_s26 }
   0xd   :  { %p3868_p6 = por %p3867_p5, %p3866_p4 }
   0xf   :  { %p3869_p7 = pnand %p3868_p6, %p3862_p3 }
  0x11   :  { %3872 = shalt.err (!%p3869_p7)
}
  0x12   :  { %s3970_s27 = smov 256   ;;  %s3971_s28 = smov 16  }
  0x13   :  { %46 = dma.hbm_to_vmem [thread:$0]  %s4233_s2, 32768, %s41_s18, [#allocation7], %s3970_s27, %s3970_s27, %s3971_s28  }
  0x14   :  { %s3972_s12 = smov [#allocation3]   ;;  %s3873_s16 = scalar_lea.hbm %s4231_s0, 2048 }
  0x15   :  { %s26_s13 = sshll.u32 %s3972_s12, 4  ;;  %p3874_p8 = scmp.ne.s32.totalorder %s4231_s0, %s3873_s16  ;;  %s27_s13 = int_to_ptr.vmem [resolvable:$true] %s26_s13 }
  0x16   :  { %p3877_p9 = scmp.lt.u32.totalorder %s3873_s16, %s4231_s0 }
  0x18   :  { %p3879_p10 = pnand %p3877_p9, %p3874_p8 }
  0x1a   :  { %3882 = shalt.err (!%p3879_p10)
}
  0x1b   :  { %s3883_s22 = scalar_lea.vmem %s27_s13, 2048  ;;  %p3888_p12 = scmp.lt.s32.totalorder %s27_s13, %s27_s13 }
  0x1c   :  { %p3884_p11 = scmp.ne.s32.totalorder %s27_s13, %s3883_s22  ;;  %p3889_p13 = scmp.lt.s32.totalorder %s3883_s22, %s3883_s22 }
  0x1e   :  { %p3890_p0 = por %p3889_p13, %p3888_p12 }
  0x20   :  { %p3891_p1 = pnand %p3890_p0, %p3884_p11 }
  0x22   :  { %3894 = shalt.err (!%p3891_p1)
}
  0x23   :  { %s3973_s2 = smov 1024   ;;  %s3974_s18 = smov 64  }
  0x24   :  { %32 = dma.hbm_to_vmem [thread:$0]  %s4231_s0, 2048, %s27_s13, [#allocation4], %s3973_s2, %s3973_s2, %s3974_s18  }
  0x25   :  { %s3975_s25 = smov [#allocation8]   ;;  %s3895_s29 = scalar_lea.hbm %s4236_s5, 8192 }
  0x26   :  { %s56_s26 = sshll.u32 %s3975_s25, 4  ;;  %p3896_p2 = scmp.ne.s32.totalorder %s4236_s5, %s3895_s29  ;;  %s57_s26 = int_to_ptr.vmem [resolvable:$true] %s56_s26 }
  0x27   :  { %p3899_p3 = scmp.lt.u32.totalorder %s3895_s29, %s4236_s5 }
  0x29   :  { %p3901_p4 = pnand %p3899_p3, %p3896_p2 }
  0x2b   :  { %3904 = shalt.err (!%p3901_p4)
}
  0x2c   :  { %s3905_s16 = scalar_lea.vmem %s57_s26, 8192  ;;  %p3910_p6 = scmp.lt.s32.totalorder %s57_s26, %s57_s26 }
  0x2d   :  { %p3906_p5 = scmp.ne.s32.totalorder %s57_s26, %s3905_s16  ;;  %p3911_p7 = scmp.lt.s32.totalorder %s3905_s16, %s3905_s16 }
  0x2f   :  { %p3912_p8 = por %p3911_p7, %p3910_p6 }
  0x31   :  { %p3913_p9 = pnand %p3912_p8, %p3906_p5 }
  0x33   :  { %3916 = shalt.err (!%p3913_p9)
}
  0x34   :  { %s3976_s0 = smov 128   ;;  %s3977_s13 = smov 8  }
  0x35   :  { %62 = dma.hbm_to_vmem [thread:$0]  %s4236_s5, 8192, %s57_s26, [#allocation7], %s3976_s0, %s3976_s0, %s3977_s13  }
  0x36   :  { %s3978_s20 = smov [#allocation9]   ;;  %s3917_s23 = scalar_lea.hbm %s4238_s7, 2048 }
  0x37   :  { %s70_s21 = sshll.u32 %s3978_s20, 4  ;;  %p3918_p10 = scmp.ne.s32.totalorder %s4238_s7, %s3917_s23  ;;  %s71_s21 = int_to_ptr.vmem [resolvable:$true] %s70_s21 }
  0x38   :  { %p3921_p11 = scmp.lt.u32.totalorder %s3917_s23, %s4238_s7 }
  0x3a   :  { %p3923_p12 = pnand %p3921_p11, %p3918_p10 }
  0x3c   :  { %3926 = shalt.err (!%p3923_p12)
}
  0x3d   :  { %s3927_s29 = scalar_lea.vmem %s71_s21, 2048  ;;  %p3932_p0 = scmp.lt.s32.totalorder %s71_s21, %s71_s21 }
  0x3e   :  { %p3928_p13 = scmp.ne.s32.totalorder %s71_s21, %s3927_s29  ;;  %p3933_p1 = scmp.lt.s32.totalorder %s3927_s29, %s3927_s29 }
  0x40   :  { %p3934_p2 = por %p3933_p1, %p3932_p0 }
  0x42   :  { %p3935_p3 = pnand %p3934_p2, %p3928_p13 }
  0x44   :  { %3938 = shalt.err (!%p3935_p3)
}
  0x45   :  { %s3979_s5 = smov 4  }
  0x46   :  { %76 = dma.hbm_to_vmem [thread:$0]  %s4238_s7, 2048, %s71_s21, [#allocation10], %s3974_s18, %s3974_s18, %s3979_s5  }
  0x47   :  { %3961 = dma.done.wait [#allocation4], 2048  }
  0x48   :  { %3962 = vsyncadd [#allocation4], 4294965248 }
  0x49   :  { %3963 = dma.done.wait [#allocation7], 40960  }
  0x4a   :  { %3964 = vsyncadd [#allocation7], 4294926336 }
  0x4b   :  { %3965 = dma.done.wait [#allocation10], 2048  }
  0x4c   :  { %3966 = vsyncadd [#allocation10], 4294965248  ;;  %v3980_v0 = vmov 0   ;;  %v379_v1 = vld [vmem:[%s4234_s3] sm:$0xff]  ;;  %vm395_vm0 = vcmask 1043456   ;;  %v121_v7 = vld [vmem:[%s4232_s1 + $0x8] sm:$0xff] }
  0x4d   :  { %440 = vmatprep.mubr.bf16.mxu0 %v3980_v0  ;;  %v2924_v2 = vcombine.high %v379_v1, %v379_v1  ;;  %v3344_v3 = vld [vmem:[#allocation6 + $0x4] ss:$16 sps:$4 sm:$0xff]   ;;  %v2923_v4 = vcombine.low %v379_v1, %v379_v1  ;;  %v3347_v5 = vld [vmem:[#allocation6] ss:$16 sps:$4 sm:$0xff]   ;;  %v380_v11 = vld [vmem:[%s4234_s3 + $0x8] sm:$0xff]  ;;  %vm391_vm1 = vcmask 64512  }
  0x4e   :  { %v120_v6 = vld [vmem:[%s4232_s1] sm:$0xff]  ;;  %1774 = vmatprep.subr.bf16.mxu1 %v3344_v3  ;;  %v2926_v13 = vcombine.high %v380_v11, %v380_v11  ;;  %v2925_v14 = vcombine.low %v380_v11, %v380_v11  ;;  %v97_v50 = vld [vmem:[#allocation3 + $0x8] sm:$0xff]  ;;  %v99_v63 = vld [vmem:[#allocation3 + $0x18] sm:$0xff] }
  0x4f   :  { %2927 = vmatprep.subr.msk.bf16.mxu0 %vm395_vm0, %v2924_v2  ;;  %v397_v8 = vsel %vm395_vm0, %v2923_v4, 0  ;;  %v122_v9 = vpack.c.bf16 %v121_v7, %v120_v6  ;;  %v3348_v10 = vld [vmem:[#allocation6 + $0x24] ss:$16 sps:$4 sm:$0xff]   ;;  %1775 = vmatpush1.bf16.msra.mxu1 %v3347_v5  ;;  %v3350_v12 = vld [vmem:[#allocation6 + $0x20] ss:$16 sps:$4 sm:$0xff]   ;;  %v105_v51 = vld [vmem:[#allocation3 + $0x48] sm:$0xff] }
  0x50   :  { %409 = vmatpush1.bf16.msra.mxu0 %v397_v8  ;;  %1776 = vmatprep.subr.bf16.mxu1 %v3348_v10  ;;  %v3353_v15 = vld [vmem:[#allocation6 + $0x44] ss:$16 sps:$4 sm:$0xff]   ;;  %v403_v16 = vsel %vm395_vm0, %v2925_v14, 0  ;;  %v3355_v18 = vld [vmem:[#allocation6 + $0x40] ss:$16 sps:$4 sm:$0xff]   ;;  %v4111_v54 = vpack.c.bf16 %v105_v51, %v97_v50 }
  0x51   :  { %2929 = vmatprep.subr.msk.bf16.mxu0 %vm395_vm0, %v2926_v13  ;;  %v3358_v17 = vld [vmem:[#allocation6 + $0x204] ss:$16 sps:$4 sm:$0xff]   ;;  %v3356_v20 = vld [vmem:[#allocation6 + $0x200] ss:$16 sps:$4 sm:$0xff]   ;;  %v3487_v51 = vld [vmem:[#allocation6 + $0x10c] ss:$16 sps:$4 sm:$0xff]  }
  0x52   :  { %v3359_v19 = vld [vmem:[#allocation6 + $0x64] ss:$16 sps:$4 sm:$0xff]   ;;  %v3361_v21 = vld [vmem:[#allocation6 + $0x60] ss:$16 sps:$4 sm:$0xff]   ;;  %1806 = vmatprep.mubr.bf16.mxu1 %v4111_v54 }
  0x53   :  { %2928 = vmatmul.mubr.msk.bf16.vlgmr.msra.gmra.mrb[0].mxu0 %vm391_vm1, %v122_v9  ;;  %1777 = vmatpush1.bf16.msra.mxu1 %v3350_v12  ;;  %v3364_v22 = vld [vmem:[#allocation6 + $0x224] ss:$16 sps:$4 sm:$0xff]   ;;  %v3362_v24 = vld [vmem:[#allocation6 + $0x220] ss:$16 sps:$4 sm:$0xff]  }
  0x54   :  { %452 = vmatpush1.bf16.msra.mxu0 %v403_v16  ;;  %1778 = vmatprep.subr.bf16.mxu1 %v3353_v15  ;;  %v3365_v23 = vld [vmem:[#allocation6 + $0x84] ss:$16 sps:$4 sm:$0xff]   ;;  %v3367_v25 = vld [vmem:[#allocation6 + $0x80] ss:$16 sps:$4 sm:$0xff]   ;;  %v3439_v15 = vld [vmem:[#allocation6 + $0xc] ss:$16 sps:$4 sm:$0xff]  }
  0x55   :  { %483 = vmatprep.mubr.bf16.mxu0 %v3980_v0  ;;  %1817 = vmatprep.subr.bf16.mxu0 %v3358_v17  ;;  %v3370_v26 = vld [vmem:[#allocation6 + $0x244] ss:$16 sps:$4 sm:$0xff]   ;;  %v3368_v28 = vld [vmem:[#allocation6 + $0x240] ss:$16 sps:$4 sm:$0xff]   ;;  %v107_v0 = vld [vmem:[#allocation3 + $0x58] sm:$0xff] }
  0x56   :  { %v3371_v27 = vld [vmem:[#allocation6 + $0xa4] ss:$16 sps:$4 sm:$0xff]   ;;  %v3373_v29 = vld [vmem:[#allocation6 + $0xa0] ss:$16 sps:$4 sm:$0xff]   ;;  %v4114_v1 = vpack.c.bf16 %v107_v0, %v99_v63  ;;  %v3497_v0 = vld [vmem:[#allocation6 + $0x148] ss:$16 sps:$4 sm:$0xff]  }
  0x57   :  { %1779 = vmatpush1.bf16.msra.mxu1 %v3355_v18  ;;  %v3376_v30 = vld [vmem:[#allocation6 + $0x264] ss:$16 sps:$4 sm:$0xff]   ;;  %v3374_v32 = vld [vmem:[#allocation6 + $0x260] ss:$16 sps:$4 sm:$0xff]   ;;  %v3437_v18 = vld [vmem:[#allocation6 + $0x8] ss:$16 sps:$4 sm:$0xff]  }
  0x58   :  { %1780 = vmatprep.subr.bf16.mxu1 %v3359_v19  ;;  %v3377_v31 = vld [vmem:[#allocation6 + $0xc4] ss:$16 sps:$4 sm:$0xff]   ;;  %v3379_v33 = vld [vmem:[#allocation6 + $0xc0] ss:$16 sps:$4 sm:$0xff]  }
  0x59   :  { %v3382_v34 = vld [vmem:[#allocation6 + $0x284] ss:$16 sps:$4 sm:$0xff]   ;;  %v3380_v36 = vld [vmem:[#allocation6 + $0x280] ss:$16 sps:$4 sm:$0xff]  }
  0x5a   :  { %v3383_v35 = vld [vmem:[#allocation6 + $0xe4] ss:$16 sps:$4 sm:$0xff]   ;;  %v3385_v37 = vld [vmem:[#allocation6 + $0xe0] ss:$16 sps:$4 sm:$0xff]  }
  0x5b   :  { %2930 = vmatmul.mubr.msk.bf16.vlgmr.msra.gmra.mrb[4].mxu0 %vm391_vm1, %v122_v9  ;;  %1781 = vmatpush1.bf16.msra.mxu1 %v3361_v21  ;;  %v3388_v38 = vld [vmem:[#allocation6 + $0x2a4] ss:$16 sps:$4 sm:$0xff]   ;;  %v3386_v40 = vld [vmem:[#allocation6 + $0x2a0] ss:$16 sps:$4 sm:$0xff]  }
  0x5c   :  { %1818 = vmatpush1.bf16.msra.mxu0 %v3356_v20  ;;  %1782 = vmatprep.subr.bf16.mxu1 %v3365_v23  ;;  %v3389_v39 = vld [vmem:[#allocation6 + $0x104] ss:$16 sps:$4 sm:$0xff]   ;;  %v3391_v41 = vld [vmem:[#allocation6 + $0x100] ss:$16 sps:$4 sm:$0xff]   ;;  %v3445_v20 = vld [vmem:[#allocation6 + $0x2c] ss:$16 sps:$4 sm:$0xff]  }
  0x5d   :  { %1819 = vmatprep.subr.bf16.mxu0 %v3364_v22  ;;  %v3394_v42 = vld [vmem:[#allocation6 + $0x2c4] ss:$16 sps:$4 sm:$0xff]   ;;  %v3392_v44 = vld [vmem:[#allocation6 + $0x2c0] ss:$16 sps:$4 sm:$0xff]   ;;  %1849 = vmatprep.mubr.bf16.mxu0 %v4114_v1  ;;  %v3443_v22 = vld [vmem:[#allocation6 + $0x28] ss:$16 sps:$4 sm:$0xff]  }
  0x5e   :  { %v3395_v43 = vld [vmem:[#allocation6 + $0x124] ss:$16 sps:$4 sm:$0xff]   ;;  %v3397_v45 = vld [vmem:[#allocation6 + $0x120] ss:$16 sps:$4 sm:$0xff]  }
  0x5f   :  { %1783 = vmatpush1.bf16.msra.mxu1 %v3367_v25  ;;  %v3400_v46 = vld [vmem:[#allocation6 + $0x2e4] ss:$16 sps:$4 sm:$0xff]   ;;  %v3398_v48 = vld [vmem:[#allocation6 + $0x2e0] ss:$16 sps:$4 sm:$0xff]  }
  0x60   :  { %1820 = vmatpush1.bf16.msra.mxu0 %v3362_v24  ;;  %1784 = vmatprep.subr.bf16.mxu1 %v3371_v27  ;;  %v3401_v47 = vld [vmem:[#allocation6 + $0x144] ss:$16 sps:$4 sm:$0xff]   ;;  %v3403_v49 = vld [vmem:[#allocation6 + $0x140] ss:$16 sps:$4 sm:$0xff]   ;;  %v3451_v24 = vld [vmem:[#allocation6 + $0x4c] ss:$16 sps:$4 sm:$0xff]  }
  0x61   :  { %1821 = vmatprep.subr.bf16.mxu0 %v3370_v26  ;;  %v3406_v52 = vld [vmem:[#allocation6 + $0x304] ss:$16 sps:$4 sm:$0xff]   ;;  %v3404_v55 = vld [vmem:[#allocation6 + $0x300] ss:$16 sps:$4 sm:$0xff]   ;;  %v3449_v26 = vld [vmem:[#allocation6 + $0x48] ss:$16 sps:$4 sm:$0xff]  }
  0x62   :  { %v3407_v53 = vld [vmem:[#allocation6 + $0x164] ss:$16 sps:$4 sm:$0xff]   ;;  %v3409_v56 = vld [vmem:[#allocation6 + $0x160] ss:$16 sps:$4 sm:$0xff]  }
  0x63   :  { %1785 = vmatpush1.bf16.msra.mxu1 %v3373_v29  ;;  %v3412_v57 = vld [vmem:[#allocation6 + $0x324] ss:$16 sps:$4 sm:$0xff]   ;;  %v3410_v59 = vld [vmem:[#allocation6 + $0x320] ss:$16 sps:$4 sm:$0xff]  }
  0x64   :  { %1822 = vmatpush1.bf16.msra.mxu0 %v3368_v28  ;;  %1786 = vmatprep.subr.bf16.mxu1 %v3377_v31  ;;  %v3413_v58 = vld [vmem:[#allocation6 + $0x184] ss:$16 sps:$4 sm:$0xff]   ;;  %v3415_v60 = vld [vmem:[#allocation6 + $0x180] ss:$16 sps:$4 sm:$0xff]  }
  0x65   :  { %1823 = vmatprep.subr.bf16.mxu0 %v3376_v30  ;;  %v3418_v61 = vld [vmem:[#allocation6 + $0x344] ss:$16 sps:$4 sm:$0xff]   ;;  %v3416_v2 = vld [vmem:[#allocation6 + $0x340] ss:$16 sps:$4 sm:$0xff]   ;;  %v3457_v30 = vld [vmem:[#allocation6 + $0x6c] ss:$16 sps:$4 sm:$0xff]  }
  0x66   :  { %v3419_v62 = vld [vmem:[#allocation6 + $0x1a4] ss:$16 sps:$4 sm:$0xff]   ;;  %v3421_v3 = vld [vmem:[#allocation6 + $0x1a0] ss:$16 sps:$4 sm:$0xff]  }
  0x67   :  { %1787 = vmatpush1.bf16.msra.mxu1 %v3379_v33  ;;  %v3424_v4 = vld [vmem:[#allocation6 + $0x364] ss:$16 sps:$4 sm:$0xff]   ;;  %v3422_v6 = vld [vmem:[#allocation6 + $0x360] ss:$16 sps:$4 sm:$0xff]   ;;  %v3455_v33 = vld [vmem:[#allocation6 + $0x68] ss:$16 sps:$4 sm:$0xff]  }
  0x68   :  { %1824 = vmatpush1.bf16.msra.mxu0 %v3374_v32  ;;  %1788 = vmatprep.subr.bf16.mxu1 %v3383_v35  ;;  %v3425_v5 = vld [vmem:[#allocation6 + $0x1c4] ss:$16 sps:$4 sm:$0xff]   ;;  %v3427_v7 = vld [vmem:[#allocation6 + $0x1c0] ss:$16 sps:$4 sm:$0xff]   ;;  %v3463_v35 = vld [vmem:[#allocation6 + $0x8c] ss:$16 sps:$4 sm:$0xff]  }
  0x69   :  { %1825 = vmatprep.subr.bf16.mxu0 %v3382_v34  ;;  %v3430_v8 = vld [vmem:[#allocation6 + $0x384] ss:$16 sps:$4 sm:$0xff]   ;;  %v3428_v10 = vld [vmem:[#allocation6 + $0x380] ss:$16 sps:$4 sm:$0xff]  }
  0x6a   :  { %v3431_v9 = vld [vmem:[#allocation6 + $0x1e4] ss:$16 sps:$4 sm:$0xff]   ;;  %v3433_v11 = vld [vmem:[#allocation6 + $0x1e0] ss:$16 sps:$4 sm:$0xff]  }
  0x6b   :  { %1789 = vmatpush1.bf16.msra.mxu1 %v3385_v37  ;;  %v3436_v12 = vld [vmem:[#allocation6 + $0x3a4] ss:$16 sps:$4 sm:$0xff]   ;;  %v3434_v16 = vld [vmem:[#allocation6 + $0x3a0] ss:$16 sps:$4 sm:$0xff]   ;;  %v3461_v37 = vld [vmem:[#allocation6 + $0x88] ss:$16 sps:$4 sm:$0xff]  }
  0x6c   :  { %1826 = vmatpush1.bf16.msra.mxu0 %v3380_v36  ;;  %1790 = vmatprep.subr.bf16.mxu1 %v3389_v39  ;;  %v96_v13 = vld [vmem:[#allocation3] sm:$0xff]  ;;  %v98_v28 = vld [vmem:[#allocation3 + $0x10] sm:$0xff]  ;;  %v3469_v39 = vld [vmem:[#allocation6 + $0xac] ss:$16 sps:$4 sm:$0xff]  }
  0x6d   :  { %1827 = vmatprep.subr.bf16.mxu0 %v3388_v38  ;;  %v104_v14 = vld [vmem:[#allocation3 + $0x40] sm:$0xff]  ;;  %v106_v29 = vld [vmem:[#allocation3 + $0x50] sm:$0xff] }
  0x6e   :  { %v4117_v17 = vpack.c.bf16 %v104_v14, %v96_v13  ;;  %v3442_v19 = vld [vmem:[#allocation6 + $0x3c4] ss:$16 sps:$4 sm:$0xff]   ;;  %v3440_v21 = vld [vmem:[#allocation6 + $0x3c0] ss:$16 sps:$4 sm:$0xff]   ;;  %v4121_v32 = vpack.c.bf16 %v106_v29, %v98_v28  ;;  %v3515_v13 = vld [vmem:[#allocation6 + $0x1a8] ss:$16 sps:$4 sm:$0xff]  }
  0x6f   :  { %1791 = vmatpush1.bf16.msra.mxu1 %v3391_v41  ;;  %v3448_v23 = vld [vmem:[#allocation6 + $0x3e4] ss:$16 sps:$4 sm:$0xff]   ;;  %v3446_v25 = vld [vmem:[#allocation6 + $0x3e0] ss:$16 sps:$4 sm:$0xff]   ;;  %v3467_v41 = vld [vmem:[#allocation6 + $0xa8] ss:$16 sps:$4 sm:$0xff]  }
  0x70   :  { %1828 = vmatpush1.bf16.msra.mxu0 %v3386_v40  ;;  %1792 = vmatprep.subr.bf16.mxu1 %v3395_v43  ;;  %v3454_v27 = vld [vmem:[#allocation6 + $0x404] ss:$16 sps:$4 sm:$0xff]   ;;  %v3452_v31 = vld [vmem:[#allocation6 + $0x400] ss:$16 sps:$4 sm:$0xff]   ;;  %v3475_v43 = vld [vmem:[#allocation6 + $0xcc] ss:$16 sps:$4 sm:$0xff]  }
  0x71   :  { %1829 = vmatprep.subr.bf16.mxu0 %v3394_v42  ;;  %v3460_v34 = vld [vmem:[#allocation6 + $0x424] ss:$16 sps:$4 sm:$0xff]   ;;  %v3458_v36 = vld [vmem:[#allocation6 + $0x420] ss:$16 sps:$4 sm:$0xff]   ;;  %v3541_v28 = vld [vmem:[#allocation6 + $0x22c] ss:$16 sps:$4 sm:$0xff]  }
  0x72   :  { %v3466_v38 = vld [vmem:[#allocation6 + $0x444] ss:$16 sps:$4 sm:$0xff]   ;;  %v3464_v40 = vld [vmem:[#allocation6 + $0x440] ss:$16 sps:$4 sm:$0xff]  }
  0x73   :  { %1793 = vmatpush1.bf16.msra.mxu1 %v3397_v45  ;;  %v3472_v42 = vld [vmem:[#allocation6 + $0x464] ss:$16 sps:$4 sm:$0xff]   ;;  %v3473_v45 = vld [vmem:[#allocation6 + $0xc8] ss:$16 sps:$4 sm:$0xff]   ;;  %v3494_v63 = vld [vmem:[#allocation6 + $0x4e0] ss:$16 sps:$4 sm:$0xff]  }
  0x74   :  { %1830 = vmatpush1.bf16.msra.mxu0 %v3392_v44  ;;  %1794 = vmatprep.subr.bf16.mxu1 %v3401_v47  ;;  %v3470_v44 = vld [vmem:[#allocation6 + $0x460] ss:$16 sps:$4 sm:$0xff]   ;;  %v3481_v47 = vld [vmem:[#allocation6 + $0xec] ss:$16 sps:$4 sm:$0xff]   ;;  %v3484_v50 = vld [vmem:[#allocation6 + $0x4a4] ss:$16 sps:$4 sm:$0xff]  }
  0x75   :  { %1831 = vmatprep.subr.bf16.mxu0 %v3400_v46  ;;  %v3478_v46 = vld [vmem:[#allocation6 + $0x484] ss:$16 sps:$4 sm:$0xff]   ;;  %v3536_v29 = vld [vmem:[#allocation6 + $0x5c0] ss:$16 sps:$4 sm:$0xff]  }
  0x76   :  { %v3520_v14 = vld [vmem:[#allocation6 + $0x564] ss:$16 sps:$4 sm:$0xff]  }
  0x77   :  { %1795 = vmatpush1.bf16.msra.mxu1 %v3403_v49  ;;  %v3479_v49 = vld [vmem:[#allocation6 + $0xe8] ss:$16 sps:$4 sm:$0xff]  }
  0x78   :  { %1832 = vmatpush1.bf16.msra.mxu0 %v3398_v48  ;;  %1796 = vmatprep.subr.bf16.mxu1 %v3407_v53  ;;  %v3476_v48 = vld [vmem:[#allocation6 + $0x480] ss:$16 sps:$4 sm:$0xff]   ;;  %v109_v53 = vld [vmem:[#allocation3 + $0x68] sm:$0xff] }
  0x79   :  { %1833 = vmatprep.subr.bf16.mxu0 %v3406_v52  ;;  %v101_v52 = vld [vmem:[#allocation3 + $0x28] sm:$0xff] }
  0x7b   :  { %1797 = vmatpush1.bf16.msra.mxu1 %v3409_v56  ;;  %v3485_v56 = vld [vmem:[#allocation6 + $0x108] ss:$16 sps:$4 sm:$0xff]  }
  0x7c   :  { %1834 = vmatpush1.bf16.msra.mxu0 %v3404_v55  ;;  %1798 = vmatprep.subr.bf16.mxu1 %v3413_v58  ;;  %v3482_v55 = vld [vmem:[#allocation6 + $0x4a0] ss:$16 sps:$4 sm:$0xff]   ;;  %v3493_v58 = vld [vmem:[#allocation6 + $0x12c] ss:$16 sps:$4 sm:$0xff]  }
  0x7d   :  { %1835 = vmatprep.subr.bf16.mxu0 %v3412_v57  ;;  %v3490_v57 = vld [vmem:[#allocation6 + $0x4c4] ss:$16 sps:$4 sm:$0xff]  }
  0x7f   :  { %1799 = vmatpush1.bf16.msra.mxu1 %v3415_v60  ;;  %v3491_v60 = vld [vmem:[#allocation6 + $0x128] ss:$16 sps:$4 sm:$0xff]  }
  0x80   :  { %1836 = vmatpush1.bf16.msra.mxu0 %v3410_v59  ;;  %1800 = vmatprep.subr.bf16.mxu1 %v3419_v62  ;;  %v3488_v59 = vld [vmem:[#allocation6 + $0x4c0] ss:$16 sps:$4 sm:$0xff]   ;;  %v3499_v62 = vld [vmem:[#allocation6 + $0x14c] ss:$16 sps:$4 sm:$0xff]  }
  0x81   :  { %1837 = vmatprep.subr.bf16.mxu0 %v3418_v61  ;;  %v3496_v61 = vld [vmem:[#allocation6 + $0x4e4] ss:$16 sps:$4 sm:$0xff]  }
  0x83   :  { %1801 = vmatpush1.bf16.msra.mxu1 %v3421_v3  ;;  %v3505_v3 = vld [vmem:[#allocation6 + $0x16c] ss:$16 sps:$4 sm:$0xff]  }
  0x84   :  { %1838 = vmatpush1.bf16.msra.mxu0 %v3416_v2  ;;  %1802 = vmatprep.subr.bf16.mxu1 %v3425_v5  ;;  %v3502_v2 = vld [vmem:[#allocation6 + $0x504] ss:$16 sps:$4 sm:$0xff]   ;;  %v3503_v5 = vld [vmem:[#allocation6 + $0x168] ss:$16 sps:$4 sm:$0xff]  }
  0x85   :  { %1839 = vmatprep.subr.bf16.mxu0 %v3424_v4  ;;  %v3500_v4 = vld [vmem:[#allocation6 + $0x500] ss:$16 sps:$4 sm:$0xff]  }
  0x87   :  { %1803 = vmatpush1.bf16.msra.mxu1 %v3427_v7  ;;  %v3511_v7 = vld [vmem:[#allocation6 + $0x18c] ss:$16 sps:$4 sm:$0xff]  }
  0x88   :  { %1840 = vmatpush1.bf16.msra.mxu0 %v3422_v6  ;;  %1804 = vmatprep.subr.bf16.mxu1 %v3431_v9  ;;  %v3508_v6 = vld [vmem:[#allocation6 + $0x524] ss:$16 sps:$4 sm:$0xff]   ;;  %v3509_v9 = vld [vmem:[#allocation6 + $0x188] ss:$16 sps:$4 sm:$0xff]  }
  0x89   :  { %1841 = vmatprep.subr.bf16.mxu0 %v3430_v8  ;;  %v3506_v8 = vld [vmem:[#allocation6 + $0x520] ss:$16 sps:$4 sm:$0xff]  }
  0x8b   :  { %1805 = vmatpush1.bf16.msra.mxu1 %v3433_v11  ;;  %v3517_v11 = vld [vmem:[#allocation6 + $0x1ac] ss:$16 sps:$4 sm:$0xff]  }
  0x8c   :  { %1842 = vmatpush1.bf16.msra.mxu0 %v3428_v10  ;;  %1946 = vmatprep.subr.bf16.mxu1 %v3439_v15  ;;  %v3514_v10 = vld [vmem:[#allocation6 + $0x544] ss:$16 sps:$4 sm:$0xff]   ;;  %v3523_v15 = vld [vmem:[#allocation6 + $0x1cc] ss:$16 sps:$4 sm:$0xff]  }
  0x8d   :  { %1843 = vmatprep.subr.bf16.mxu0 %v3436_v12  ;;  %v3512_v12 = vld [vmem:[#allocation6 + $0x540] ss:$16 sps:$4 sm:$0xff]  }
  0x8e   :  { %1807 = vmatmul.mubr.bf16.vlgmr.msra.gmra.mrb[0].mxu1 %v4117_v17 }
  0x8f   :  { %1947 = vmatpush1.bf16.msra.mxu1 %v3437_v18  ;;  %1978 = vmatprep.mubr.bf16.mxu1 %v4111_v54  ;;  %v4124_v54 = vpack.c.bf16 %v109_v53, %v101_v52  ;;  %v3521_v18 = vld [vmem:[#allocation6 + $0x1c8] ss:$16 sps:$4 sm:$0xff]   ;;  %v3568_v52 = vld [vmem:[#allocation6 + $0x664] ss:$16 sps:$4 sm:$0xff]   ;;  %v3571_v53 = vld [vmem:[#allocation6 + $0x2cc] ss:$16 sps:$4 sm:$0xff]  }
  0x90   :  { %1844 = vmatpush1.bf16.msra.mxu0 %v3434_v16  ;;  %1948 = vmatprep.subr.bf16.mxu1 %v3445_v20  ;;  %v3518_v16 = vld [vmem:[#allocation6 + $0x560] ss:$16 sps:$4 sm:$0xff]   ;;  %v3529_v20 = vld [vmem:[#allocation6 + $0x1ec] ss:$16 sps:$4 sm:$0xff]  }
  0x91   :  { %1845 = vmatprep.subr.bf16.mxu0 %v3442_v19  ;;  %v3526_v19 = vld [vmem:[#allocation6 + $0x584] ss:$16 sps:$4 sm:$0xff]  }
  0x93   :  { %1949 = vmatpush1.bf16.msra.mxu1 %v3443_v22  ;;  %v3527_v22 = vld [vmem:[#allocation6 + $0x1e8] ss:$16 sps:$4 sm:$0xff]  }
  0x94   :  { %1846 = vmatpush1.bf16.msra.mxu0 %v3440_v21  ;;  %1950 = vmatprep.subr.bf16.mxu1 %v3451_v24  ;;  %v3524_v21 = vld [vmem:[#allocation6 + $0x580] ss:$16 sps:$4 sm:$0xff]   ;;  %v3535_v24 = vld [vmem:[#allocation6 + $0x20c] ss:$16 sps:$4 sm:$0xff]  }
  0x95   :  { %1847 = vmatprep.subr.bf16.mxu0 %v3448_v23  ;;  %v3532_v23 = vld [vmem:[#allocation6 + $0x5a4] ss:$16 sps:$4 sm:$0xff]  }
  0x97   :  { %1951 = vmatpush1.bf16.msra.mxu1 %v3449_v26  ;;  %v3533_v26 = vld [vmem:[#allocation6 + $0x208] ss:$16 sps:$4 sm:$0xff]  }
  0x98   :  { %1848 = vmatpush1.bf16.msra.mxu0 %v3446_v25  ;;  %1952 = vmatprep.subr.bf16.mxu1 %v3457_v30  ;;  %v3530_v25 = vld [vmem:[#allocation6 + $0x5a0] ss:$16 sps:$4 sm:$0xff]   ;;  %v3539_v30 = vld [vmem:[#allocation6 + $0x228] ss:$16 sps:$4 sm:$0xff]  }
  0x99   :  { %1860 = vmatprep.subr.bf16.mxu0 %v3454_v27  ;;  %v3538_v27 = vld [vmem:[#allocation6 + $0x5c4] ss:$16 sps:$4 sm:$0xff]  }
  0x9b   :  { %1850 = vmatmul.mubr.bf16.vlgmr.msra.gmra.mrb[8].mxu0 %v4121_v32  ;;  %1953 = vmatpush1.bf16.msra.mxu1 %v3455_v33  ;;  %v3547_v33 = vld [vmem:[#allocation6 + $0x24c] ss:$16 sps:$4 sm:$0xff]  }
  0x9c   :  { %1861 = vmatpush1.bf16.msra.mxu0 %v3452_v31  ;;  %1954 = vmatprep.subr.bf16.mxu1 %v3463_v35  ;;  %v3544_v31 = vld [vmem:[#allocation6 + $0x5e4] ss:$16 sps:$4 sm:$0xff]   ;;  %v3545_v35 = vld [vmem:[#allocation6 + $0x248] ss:$16 sps:$4 sm:$0xff]  }
  0x9d   :  { %1862 = vmatprep.subr.bf16.mxu0 %v3460_v34  ;;  %1892 = vmatprep.mubr.bf16.mxu0 %v4124_v54  ;;  %v3542_v34 = vld [vmem:[#allocation6 + $0x5e0] ss:$16 sps:$4 sm:$0xff]  }
  0x9f   :  { %1955 = vmatpush1.bf16.msra.mxu1 %v3461_v37  ;;  %v108_v37 = vld [vmem:[#allocation3 + $0x60] sm:$0xff] }
  0xa0   :  { %1863 = vmatpush1.bf16.msra.mxu0 %v3458_v36  ;;  %1956 = vmatprep.subr.bf16.mxu1 %v3469_v39  ;;  %v100_v36 = vld [vmem:[#allocation3 + $0x20] sm:$0xff] }
  0xa1   :  { %1864 = vmatprep.subr.bf16.mxu0 %v3466_v38  ;;  %v3550_v38 = vld [vmem:[#allocation6 + $0x604] ss:$16 sps:$4 sm:$0xff]   ;;  %v3548_v39 = vld [vmem:[#allocation6 + $0x600] ss:$16 sps:$4 sm:$0xff]  }
  0xa3   :  { %1957 = vmatpush1.bf16.msra.mxu1 %v3467_v41  ;;  %v4129_v41 = vpack.c.bf16 %v108_v37, %v100_v36  ;;  %v3634_v36 = vld [vmem:[#allocation6 + $0x7c4] ss:$16 sps:$4 sm:$0xff]   ;;  %v3637_v37 = vld [vmem:[#allocation6 + $0x42c] ss:$16 sps:$4 sm:$0xff]  }
  0xa4   :  { %1865 = vmatpush1.bf16.msra.mxu0 %v3464_v40  ;;  %1958 = vmatprep.subr.bf16.mxu1 %v3475_v43  ;;  %v3551_v40 = vld [vmem:[#allocation6 + $0x268] ss:$16 sps:$4 sm:$0xff]  }
  0xa5   :  { %1866 = vmatprep.subr.bf16.mxu0 %v3472_v42  ;;  %v103_v42 = vld [vmem:[#allocation3 + $0x38] sm:$0xff] }
  0xa6   :  { %v111_v43 = vld [vmem:[#allocation3 + $0x78] sm:$0xff] }
  0xa7   :  { %1959 = vmatpush1.bf16.msra.mxu1 %v3473_v45  ;;  %v4131_v45 = vpack.c.bf16 %v111_v43, %v103_v42  ;;  %v3638_v42 = vld [vmem:[#allocation6 + $0x7e0] ss:$16 sps:$4 sm:$0xff]   ;;  %v3641_v43 = vld [vmem:[#allocation6 + $0x448] ss:$16 sps:$4 sm:$0xff]  }
  0xa8   :  { %1867 = vmatpush1.bf16.msra.mxu0 %v3470_v44  ;;  %1960 = vmatprep.subr.bf16.mxu1 %v3481_v47  ;;  %v3556_v44 = vld [vmem:[#allocation6 + $0x624] ss:$16 sps:$4 sm:$0xff]   ;;  %v3557_v47 = vld [vmem:[#allocation6 + $0x288] ss:$16 sps:$4 sm:$0xff]  }
  0xa9   :  { %1868 = vmatprep.subr.bf16.mxu0 %v3478_v46  ;;  %v3554_v46 = vld [vmem:[#allocation6 + $0x620] ss:$16 sps:$4 sm:$0xff]  }
  0xab   :  { %1961 = vmatpush1.bf16.msra.mxu1 %v3479_v49  ;;  %v3565_v49 = vld [vmem:[#allocation6 + $0x2ac] ss:$16 sps:$4 sm:$0xff]  }
  0xac   :  { %1869 = vmatpush1.bf16.msra.mxu0 %v3476_v48  ;;  %1962 = vmatprep.subr.bf16.mxu1 %v3487_v51  ;;  %v3562_v48 = vld [vmem:[#allocation6 + $0x644] ss:$16 sps:$4 sm:$0xff]   ;;  %v3563_v51 = vld [vmem:[#allocation6 + $0x2a8] ss:$16 sps:$4 sm:$0xff]  }
  0xad   :  { %1870 = vmatprep.subr.bf16.mxu0 %v3484_v50  ;;  %v3560_v50 = vld [vmem:[#allocation6 + $0x640] ss:$16 sps:$4 sm:$0xff]  }
  0xaf   :  { %1963 = vmatpush1.bf16.msra.mxu1 %v3485_v56  ;;  %v3569_v56 = vld [vmem:[#allocation6 + $0x2c8] ss:$16 sps:$4 sm:$0xff]  }
  0xb0   :  { %1871 = vmatpush1.bf16.msra.mxu0 %v3482_v55  ;;  %1964 = vmatprep.subr.bf16.mxu1 %v3493_v58  ;;  %v3566_v55 = vld [vmem:[#allocation6 + $0x660] ss:$16 sps:$4 sm:$0xff]   ;;  %v3577_v58 = vld [vmem:[#allocation6 + $0x2ec] ss:$16 sps:$4 sm:$0xff]  }
  0xb1   :  { %1872 = vmatprep.subr.bf16.mxu0 %v3490_v57  ;;  %v3574_v57 = vld [vmem:[#allocation6 + $0x684] ss:$16 sps:$4 sm:$0xff]  }
  0xb3   :  { %1965 = vmatpush1.bf16.msra.mxu1 %v3491_v60  ;;  %v3575_v60 = vld [vmem:[#allocation6 + $0x2e8] ss:$16 sps:$4 sm:$0xff]  }
  0xb4   :  { %1873 = vmatpush1.bf16.msra.mxu0 %v3488_v59  ;;  %1966 = vmatprep.subr.bf16.mxu1 %v3499_v62  ;;  %v3572_v59 = vld [vmem:[#allocation6 + $0x680] ss:$16 sps:$4 sm:$0xff]   ;;  %v3583_v62 = vld [vmem:[#allocation6 + $0x30c] ss:$16 sps:$4 sm:$0xff]  }
  0xb5   :  { %1874 = vmatprep.subr.bf16.mxu0 %v3496_v61  ;;  %v3580_v61 = vld [vmem:[#allocation6 + $0x6a4] ss:$16 sps:$4 sm:$0xff]  }
  0xb7   :  { %1967 = vmatpush1.bf16.msra.mxu1 %v3497_v0  ;;  %v3581_v0 = vld [vmem:[#allocation6 + $0x308] ss:$16 sps:$4 sm:$0xff]  }
  0xb8   :  { %1875 = vmatpush1.bf16.msra.mxu0 %v3494_v63  ;;  %1968 = vmatprep.subr.bf16.mxu1 %v3505_v3  ;;  %v3578_v63 = vld [vmem:[#allocation6 + $0x6a0] ss:$16 sps:$4 sm:$0xff]   ;;  %v3589_v3 = vld [vmem:[#allocation6 + $0x32c] ss:$16 sps:$4 sm:$0xff]  }
  0xb9   :  { %1876 = vmatprep.subr.bf16.mxu0 %v3502_v2  ;;  %v3586_v2 = vld [vmem:[#allocation6 + $0x6c4] ss:$16 sps:$4 sm:$0xff]  }
  0xbb   :  { %1969 = vmatpush1.bf16.msra.mxu1 %v3503_v5  ;;  %v3587_v5 = vld [vmem:[#allocation6 + $0x328] ss:$16 sps:$4 sm:$0xff]  }
  0xbc   :  { %1877 = vmatpush1.bf16.msra.mxu0 %v3500_v4  ;;  %1970 = vmatprep.subr.bf16.mxu1 %v3511_v7  ;;  %v3584_v4 = vld [vmem:[#allocation6 + $0x6c0] ss:$16 sps:$4 sm:$0xff]   ;;  %v3595_v7 = vld [vmem:[#allocation6 + $0x34c] ss:$16 sps:$4 sm:$0xff]  }
  0xbd   :  { %1878 = vmatprep.subr.bf16.mxu0 %v3508_v6  ;;  %v3592_v6 = vld [vmem:[#allocation6 + $0x6e4] ss:$16 sps:$4 sm:$0xff]  }
  0xbf   :  { %1971 = vmatpush1.bf16.msra.mxu1 %v3509_v9  ;;  %v3593_v9 = vld [vmem:[#allocation6 + $0x348] ss:$16 sps:$4 sm:$0xff]  }
  0xc0   :  { %1879 = vmatpush1.bf16.msra.mxu0 %v3506_v8  ;;  %1972 = vmatprep.subr.bf16.mxu1 %v3517_v11  ;;  %v3590_v8 = vld [vmem:[#allocation6 + $0x6e0] ss:$16 sps:$4 sm:$0xff]   ;;  %v3601_v11 = vld [vmem:[#allocation6 + $0x36c] ss:$16 sps:$4 sm:$0xff]  }
  0xc1   :  { %1880 = vmatprep.subr.bf16.mxu0 %v3514_v10  ;;  %v3598_v10 = vld [vmem:[#allocation6 + $0x704] ss:$16 sps:$4 sm:$0xff]  }
  0xc3   :  { %1973 = vmatpush1.bf16.msra.mxu1 %v3515_v13  ;;  %v3599_v13 = vld [vmem:[#allocation6 + $0x368] ss:$16 sps:$4 sm:$0xff]  }
  0xc4   :  { %1881 = vmatpush1.bf16.msra.mxu0 %v3512_v12  ;;  %1974 = vmatprep.subr.bf16.mxu1 %v3523_v15  ;;  %v3596_v12 = vld [vmem:[#allocation6 + $0x700] ss:$16 sps:$4 sm:$0xff]   ;;  %v3607_v15 = vld [vmem:[#allocation6 + $0x38c] ss:$16 sps:$4 sm:$0xff]  }
  0xc5   :  { %1882 = vmatprep.subr.bf16.mxu0 %v3520_v14  ;;  %v3604_v14 = vld [vmem:[#allocation6 + $0x724] ss:$16 sps:$4 sm:$0xff]  }
  0xc7   :  { %1975 = vmatpush1.bf16.msra.mxu1 %v3521_v18  ;;  %v3605_v18 = vld [vmem:[#allocation6 + $0x388] ss:$16 sps:$4 sm:$0xff]  }
  0xc8   :  { %1883 = vmatpush1.bf16.msra.mxu0 %v3518_v16  ;;  %1976 = vmatprep.subr.bf16.mxu1 %v3529_v20  ;;  %v3602_v16 = vld [vmem:[#allocation6 + $0x720] ss:$16 sps:$4 sm:$0xff]   ;;  %v3613_v20 = vld [vmem:[#allocation6 + $0x3ac] ss:$16 sps:$4 sm:$0xff]  }
  0xc9   :  { %1884 = vmatprep.subr.bf16.mxu0 %v3526_v19  ;;  %v3610_v19 = vld [vmem:[#allocation6 + $0x744] ss:$16 sps:$4 sm:$0xff]  }
  0xcb   :  { %1977 = vmatpush1.bf16.msra.mxu1 %v3527_v22  ;;  %v3611_v22 = vld [vmem:[#allocation6 + $0x3a8] ss:$16 sps:$4 sm:$0xff]  }
  0xcc   :  { %1885 = vmatpush1.bf16.msra.mxu0 %v3524_v21  ;;  %1989 = vmatprep.subr.bf16.mxu1 %v3535_v24  ;;  %v3608_v21 = vld [vmem:[#allocation6 + $0x740] ss:$16 sps:$4 sm:$0xff]   ;;  %v3619_v24 = vld [vmem:[#allocation6 + $0x3cc] ss:$16 sps:$4 sm:$0xff]  }
  0xcd   :  { %1886 = vmatprep.subr.bf16.mxu0 %v3532_v23  ;;  %v3616_v23 = vld [vmem:[#allocation6 + $0x764] ss:$16 sps:$4 sm:$0xff]  }
  0xce   :  { %1979 = vmatmul.mubr.bf16.vlgmr.msra.gmra.mrb[4].mxu1 %v4117_v17  ;;  %v3553_v17 = vld [vmem:[#allocation6 + $0x26c] ss:$16 sps:$4 sm:$0xff]  }
  0xcf   :  { %1990 = vmatpush1.bf16.msra.mxu1 %v3533_v26  ;;  %2021 = vmatprep.mubr.bf16.mxu1 %v4114_v1  ;;  %v3559_v1 = vld [vmem:[#allocation6 + $0x28c] ss:$16 sps:$4 sm:$0xff]   ;;  %v3617_v26 = vld [vmem:[#allocation6 + $0x3c8] ss:$16 sps:$4 sm:$0xff]  }
  0xd0   :  { %1887 = vmatpush1.bf16.msra.mxu0 %v3530_v25  ;;  %1991 = vmatprep.subr.bf16.mxu1 %v3541_v28  ;;  %v3614_v25 = vld [vmem:[#allocation6 + $0x760] ss:$16 sps:$4 sm:$0xff]   ;;  %v3625_v28 = vld [vmem:[#allocation6 + $0x3ec] ss:$16 sps:$4 sm:$0xff]  }
  0xd1   :  { %1888 = vmatprep.subr.bf16.mxu0 %v3538_v27  ;;  %v3622_v27 = vld [vmem:[#allocation6 + $0x784] ss:$16 sps:$4 sm:$0xff]  }
  0xd3   :  { %1992 = vmatpush1.bf16.msra.mxu1 %v3539_v30  ;;  %v3623_v30 = vld [vmem:[#allocation6 + $0x3e8] ss:$16 sps:$4 sm:$0xff]  }
  0xd4   :  { %1889 = vmatpush1.bf16.msra.mxu0 %v3536_v29  ;;  %1993 = vmatprep.subr.bf16.mxu1 %v3547_v33  ;;  %v3620_v29 = vld [vmem:[#allocation6 + $0x780] ss:$16 sps:$4 sm:$0xff]   ;;  %v3631_v33 = vld [vmem:[#allocation6 + $0x40c] ss:$16 sps:$4 sm:$0xff]  }
  0xd5   :  { %1890 = vmatprep.subr.bf16.mxu0 %v3544_v31  ;;  %v3628_v31 = vld [vmem:[#allocation6 + $0x7a4] ss:$16 sps:$4 sm:$0xff]  }
  0xd7   :  { %1994 = vmatpush1.bf16.msra.mxu1 %v3545_v35  ;;  %v3629_v35 = vld [vmem:[#allocation6 + $0x408] ss:$16 sps:$4 sm:$0xff]  }
  0xd8   :  { %1891 = vmatpush1.bf16.msra.mxu0 %v3542_v34  ;;  %1995 = vmatprep.subr.bf16.mxu1 %v3553_v17  ;;  %v3626_v34 = vld [vmem:[#allocation6 + $0x7a0] ss:$16 sps:$4 sm:$0xff]   ;;  %v3635_v17 = vld [vmem:[#allocation6 + $0x428] ss:$16 sps:$4 sm:$0xff]  }
  0xd9   :  { %1903 = vmatprep.subr.bf16.mxu0 %v3550_v38  ;;  %v3632_v38 = vld [vmem:[#allocation6 + $0x7c0] ss:$16 sps:$4 sm:$0xff]  }
  0xdb   :  { %1893 = vmatmul.mubr.bf16.vlgmr.msra.gmra.mrb[8].mxu0 %v4129_v41  ;;  %1996 = vmatpush1.bf16.msra.mxu1 %v3551_v40  ;;  %v3643_v40 = vld [vmem:[#allocation6 + $0x44c] ss:$16 sps:$4 sm:$0xff]  }
  0xdc   :  { %1904 = vmatpush1.bf16.msra.mxu0 %v3548_v39  ;;  %1997 = vmatprep.subr.bf16.mxu1 %v3559_v1  ;;  %v3640_v39 = vld [vmem:[#allocation6 + $0x7e4] ss:$16 sps:$4 sm:$0xff]  }
  0xdd   :  { %1905 = vmatprep.subr.bf16.mxu0 %v3556_v44  ;;  %1935 = vmatprep.mubr.bf16.mxu0 %v4131_v45  ;;  %v102_v44 = vld [vmem:[#allocation3 + $0x30] sm:$0xff] }
  0xde   :  { %v110_v1 = vld [vmem:[#allocation3 + $0x70] sm:$0xff] }
  0xdf   :  { %1998 = vmatpush1.bf16.msra.mxu1 %v3557_v47  ;;  %v3644_v47 = vld [vmem:[#allocation6 + $0x468] ss:$16 sps:$4 sm:$0xff]  }
  0xe0   :  { %1906 = vmatpush1.bf16.msra.mxu0 %v3554_v46  ;;  %1999 = vmatprep.subr.bf16.mxu1 %v3565_v49  ;;  %v3646_v46 = vld [vmem:[#allocation6 + $0x46c] ss:$16 sps:$4 sm:$0xff]  }
  0xe1   :  { %1907 = vmatprep.subr.bf16.mxu0 %v3562_v48  ;;  %v4137_v48 = vpack.c.bf16 %v110_v1, %v102_v44  ;;  %v3649_v49 = vld [vmem:[#allocation6 + $0x48c] ss:$16 sps:$4 sm:$0xff]   ;;  %v3767_v44 = vld [vmem:[#allocation8 + $0xc0] ss:$8 sps:$4 sm:$0xff]  }
  0xe2   :  { %v3685_v1 = vld [vmem:[#allocation6 + $0x60c] ss:$16 sps:$4 sm:$0xff]  }
  0xe3   :  { %2000 = vmatpush1.bf16.msra.mxu1 %v3563_v51  ;;  %v3736_v51 = vld [vmem:[#allocation8 + $0x14] ss:$8 sps:$4 sm:$0xff]  }
  0xe4   :  { %1908 = vmatpush1.bf16.msra.mxu0 %v3560_v50  ;;  %2001 = vmatprep.subr.bf16.mxu1 %v3571_v53  ;;  %v3731_v50 = vld [vmem:[#allocation8] ss:$8 sps:$4 sm:$0xff]   ;;  %v3652_v53 = vld [vmem:[#allocation6 + $0x4ac] ss:$16 sps:$4 sm:$0xff]  }
  0xe5   :  { %1909 = vmatprep.subr.bf16.mxu0 %v3568_v52  ;;  %v3734_v52 = vld [vmem:[#allocation8 + $0x10] ss:$8 sps:$4 sm:$0xff]  }
  0xe7   :  { %2002 = vmatpush1.bf16.msra.mxu1 %v3569_v56  ;;  %v3650_v56 = vld [vmem:[#allocation6 + $0x4a8] ss:$16 sps:$4 sm:$0xff]  }
  0xe8   :  { %1910 = vmatpush1.bf16.msra.mxu0 %v3566_v55  ;;  %2003 = vmatprep.subr.bf16.mxu1 %v3577_v58  ;;  %v3739_v55 = vld [vmem:[#allocation8 + $0x24] ss:$8 sps:$4 sm:$0xff]  }
  0xe9   :  { %1911 = vmatprep.subr.bf16.mxu0 %v3574_v57  ;;  %v3737_v57 = vld [vmem:[#allocation8 + $0x20] ss:$8 sps:$4 sm:$0xff]   ;;  %v3655_v58 = vld [vmem:[#allocation6 + $0x4cc] ss:$16 sps:$4 sm:$0xff]  }
  0xeb   :  { %2004 = vmatpush1.bf16.msra.mxu1 %v3575_v60  ;;  %v3653_v60 = vld [vmem:[#allocation6 + $0x4c8] ss:$16 sps:$4 sm:$0xff]  }
  0xec   :  { %1912 = vmatpush1.bf16.msra.mxu0 %v3572_v59  ;;  %2005 = vmatprep.subr.bf16.mxu1 %v3583_v62  ;;  %v3742_v59 = vld [vmem:[#allocation8 + $0x34] ss:$8 sps:$4 sm:$0xff]  }
  0xed   :  { %1913 = vmatprep.subr.bf16.mxu0 %v3580_v61  ;;  %v3740_v61 = vld [vmem:[#allocation8 + $0x30] ss:$8 sps:$4 sm:$0xff]   ;;  %v3658_v62 = vld [vmem:[#allocation6 + $0x4ec] ss:$16 sps:$4 sm:$0xff]  }
  0xef   :  { %2006 = vmatpush1.bf16.msra.mxu1 %v3581_v0 }
  0xf0   :  { %1914 = vmatpush1.bf16.msra.mxu0 %v3578_v63  ;;  %2007 = vmatprep.subr.bf16.mxu1 %v3589_v3  ;;  %v3745_v63 = vld [vmem:[#allocation8 + $0x44] ss:$8 sps:$4 sm:$0xff]   ;;  %v3656_v3 = vld [vmem:[#allocation6 + $0x4e8] ss:$16 sps:$4 sm:$0xff]  }
  0xf1   :  { %1915 = vmatprep.subr.bf16.mxu0 %v3586_v2 }
  0xf3   :  { %2008 = vmatpush1.bf16.msra.mxu1 %v3587_v5  ;;  %v3743_v5 = vld [vmem:[#allocation8 + $0x40] ss:$8 sps:$4 sm:$0xff]  }
  0xf4   :  { %1916 = vmatpush1.bf16.msra.mxu0 %v3584_v4  ;;  %2009 = vmatprep.subr.bf16.mxu1 %v3595_v7 }
  0xf5   :  { %1917 = vmatprep.subr.bf16.mxu0 %v3592_v6  ;;  %v3661_v6 = vld [vmem:[#allocation6 + $0x50c] ss:$16 sps:$4 sm:$0xff]  }
  0xf7   :  { %2010 = vmatpush1.bf16.msra.mxu1 %v3593_v9  ;;  %v3659_v9 = vld [vmem:[#allocation6 + $0x508] ss:$16 sps:$4 sm:$0xff]  }
  0xf8   :  { %1918 = vmatpush1.bf16.msra.mxu0 %v3590_v8  ;;  %2011 = vmatprep.subr.bf16.mxu1 %v3601_v11  ;;  %v3748_v8 = vld [vmem:[#allocation8 + $0x54] ss:$8 sps:$4 sm:$0xff]  }
  0xf9   :  { %1919 = vmatprep.subr.bf16.mxu0 %v3598_v10  ;;  %v3746_v10 = vld [vmem:[#allocation8 + $0x50] ss:$8 sps:$4 sm:$0xff]   ;;  %v3664_v11 = vld [vmem:[#allocation6 + $0x52c] ss:$16 sps:$4 sm:$0xff]  }
  0xfb   :  { %2012 = vmatpush1.bf16.msra.mxu1 %v3599_v13 }
  0xfc   :  { %1920 = vmatpush1.bf16.msra.mxu0 %v3596_v12  ;;  %2013 = vmatprep.subr.bf16.mxu1 %v3607_v15  ;;  %v3751_v12 = vld [vmem:[#allocation8 + $0x64] ss:$8 sps:$4 sm:$0xff]   ;;  %v3662_v15 = vld [vmem:[#allocation6 + $0x528] ss:$16 sps:$4 sm:$0xff]  }
  0xfd   :  { %1921 = vmatprep.subr.bf16.mxu0 %v3604_v14 }
  0xff   :  { %2014 = vmatpush1.bf16.msra.mxu1 %v3605_v18  ;;  %v3749_v18 = vld [vmem:[#allocation8 + $0x60] ss:$8 sps:$4 sm:$0xff]  }
 0x100   :  { %1922 = vmatpush1.bf16.msra.mxu0 %v3602_v16  ;;  %2015 = vmatprep.subr.bf16.mxu1 %v3613_v20 }
 0x101   :  { %1923 = vmatprep.subr.bf16.mxu0 %v3610_v19  ;;  %v3667_v19 = vld [vmem:[#allocation6 + $0x54c] ss:$16 sps:$4 sm:$0xff]  }
 0x103   :  { %2016 = vmatpush1.bf16.msra.mxu1 %v3611_v22  ;;  %v3665_v22 = vld [vmem:[#allocation6 + $0x548] ss:$16 sps:$4 sm:$0xff]  }
 0x104   :  { %1924 = vmatpush1.bf16.msra.mxu0 %v3608_v21  ;;  %2017 = vmatprep.subr.bf16.mxu1 %v3619_v24  ;;  %v3754_v21 = vld [vmem:[#allocation8 + $0x74] ss:$8 sps:$4 sm:$0xff]  }
 0x105   :  { %1925 = vmatprep.subr.bf16.mxu0 %v3616_v23  ;;  %v3752_v23 = vld [vmem:[#allocation8 + $0x70] ss:$8 sps:$4 sm:$0xff]   ;;  %v3670_v24 = vld [vmem:[#allocation6 + $0x56c] ss:$16 sps:$4 sm:$0xff]  }
 0x107   :  { %2018 = vmatpush1.bf16.msra.mxu1 %v3617_v26  ;;  %v3668_v26 = vld [vmem:[#allocation6 + $0x568] ss:$16 sps:$4 sm:$0xff]  }
 0x108   :  { %1926 = vmatpush1.bf16.msra.mxu0 %v3614_v25  ;;  %2019 = vmatprep.subr.bf16.mxu1 %v3625_v28  ;;  %v3757_v25 = vld [vmem:[#allocation8 + $0x84] ss:$8 sps:$4 sm:$0xff]  }
 0x109   :  { %1927 = vmatprep.subr.bf16.mxu0 %v3622_v27  ;;  %v3755_v27 = vld [vmem:[#allocation8 + $0x80] ss:$8 sps:$4 sm:$0xff]   ;;  %v3673_v28 = vld [vmem:[#allocation6 + $0x58c] ss:$16 sps:$4 sm:$0xff]  }
 0x10b   :  { %2020 = vmatpush1.bf16.msra.mxu1 %v3623_v30  ;;  %v3671_v30 = vld [vmem:[#allocation6 + $0x588] ss:$16 sps:$4 sm:$0xff]  }
 0x10c   :  { %1928 = vmatpush1.bf16.msra.mxu0 %v3620_v29  ;;  %2032 = vmatprep.subr.bf16.mxu1 %v3631_v33  ;;  %v3760_v29 = vld [vmem:[#allocation8 + $0x94] ss:$8 sps:$4 sm:$0xff]  }
 0x10d   :  { %1929 = vmatprep.subr.bf16.mxu0 %v3628_v31  ;;  %v3758_v31 = vld [vmem:[#allocation8 + $0x90] ss:$8 sps:$4 sm:$0xff]   ;;  %v3676_v33 = vld [vmem:[#allocation6 + $0x5ac] ss:$16 sps:$4 sm:$0xff]  }
 0x10e   :  { %2022 = vmatmul.mubr.bf16.vlgmr.msra.gmra.mrb[4].mxu1 %v4121_v32  ;;  %v3733_v32 = vld [vmem:[#allocation8 + $0x4] ss:$8 sps:$4 sm:$0xff]  }
 0x10f   :  { %2033 = vmatpush1.bf16.msra.mxu1 %v3629_v35  ;;  %2064 = vmatprep.mubr.bf16.mxu1 %v4124_v54  ;;  %v3647_v54 = vld [vmem:[#allocation6 + $0x488] ss:$16 sps:$4 sm:$0xff]  }
 0x110   :  { %1930 = vmatpush1.bf16.msra.mxu0 %v3626_v34  ;;  %2034 = vmatprep.subr.bf16.mxu1 %v3637_v37  ;;  %v3763_v34 = vld [vmem:[#allocation8 + $0xa4] ss:$8 sps:$4 sm:$0xff]   ;;  %v3674_v35 = vld [vmem:[#allocation6 + $0x5a8] ss:$16 sps:$4 sm:$0xff]  }
 0x111   :  { %1931 = vmatprep.subr.bf16.mxu0 %v3634_v36  ;;  %v3761_v36 = vld [vmem:[#allocation8 + $0xa0] ss:$8 sps:$4 sm:$0xff]   ;;  %v3679_v37 = vld [vmem:[#allocation6 + $0x5cc] ss:$16 sps:$4 sm:$0xff]  }
 0x113   :  { %2035 = vmatpush1.bf16.msra.mxu1 %v3635_v17  ;;  %v3677_v17 = vld [vmem:[#allocation6 + $0x5c8] ss:$16 sps:$4 sm:$0xff]  }
 0x114   :  { %1932 = vmatpush1.bf16.msra.mxu0 %v3632_v38  ;;  %2036 = vmatprep.subr.bf16.mxu1 %v3643_v40  ;;  %v3766_v38 = vld [vmem:[#allocation8 + $0xb4] ss:$8 sps:$4 sm:$0xff]  }
 0x115   :  { %1933 = vmatprep.subr.bf16.mxu0 %v3640_v39  ;;  %v3764_v39 = vld [vmem:[#allocation8 + $0xb0] ss:$8 sps:$4 sm:$0xff]   ;;  %v3682_v40 = vld [vmem:[#allocation6 + $0x5ec] ss:$16 sps:$4 sm:$0xff]  }
 0x117   :  { %2037 = vmatpush1.bf16.msra.mxu1 %v3641_v43  ;;  %v3680_v43 = vld [vmem:[#allocation6 + $0x5e8] ss:$16 sps:$4 sm:$0xff]  }
 0x118   :  { %1934 = vmatpush1.bf16.msra.mxu0 %v3638_v42  ;;  %2038 = vmatprep.subr.bf16.mxu1 %v3646_v46  ;;  %v3769_v42 = vld [vmem:[#allocation8 + $0xc4] ss:$8 sps:$4 sm:$0xff]   ;;  %v3683_v46 = vld [vmem:[#allocation6 + $0x608] ss:$16 sps:$4 sm:$0xff]  }
 0x119   :  { %2572 = vmatprep.subr.bf16.mxu0 %v3733_v32  ;;  %v3688_v32 = vld [vmem:[#allocation6 + $0x62c] ss:$16 sps:$4 sm:$0xff]  }
 0x11b   :  { %1936 = vmatmul.mubr.bf16.vlgmr.msra.gmra.mrb[8].mxu0 %v4137_v48  ;;  %2039 = vmatpush1.bf16.msra.mxu1 %v3644_v47  ;;  %v3686_v47 = vld [vmem:[#allocation6 + $0x628] ss:$16 sps:$4 sm:$0xff]  }
 0x11c   :  { %2573 = vmatpush1.bf16.msra.mxu0 %v3731_v50  ;;  %2040 = vmatprep.subr.bf16.mxu1 %v3649_v49  ;;  %v3691_v49 = vld [vmem:[#allocation6 + $0x64c] ss:$16 sps:$4 sm:$0xff]   ;;  %v3689_v50 = vld [vmem:[#allocation6 + $0x648] ss:$16 sps:$4 sm:$0xff]  }
 0x11d   :  { %2574 = vmatprep.subr.bf16.mxu0 %v3736_v51  ;;  %v3694_v51 = vld [vmem:[#allocation6 + $0x66c] ss:$16 sps:$4 sm:$0xff]  }
 0x11f   :  { %2041 = vmatpush1.bf16.msra.mxu1 %v3647_v54  ;;  %v3692_v54 = vld [vmem:[#allocation6 + $0x668] ss:$16 sps:$4 sm:$0xff]  }
 0x120   :  { %2575 = vmatpush1.bf16.msra.mxu0 %v3734_v52  ;;  %2042 = vmatprep.subr.bf16.mxu1 %v3652_v53  ;;  %v3697_v52 = vld [vmem:[#allocation6 + $0x68c] ss:$16 sps:$4 sm:$0xff]   ;;  %v3695_v53 = vld [vmem:[#allocation6 + $0x688] ss:$16 sps:$4 sm:$0xff]  }
 0x121   :  { %2576 = vmatprep.subr.bf16.mxu0 %v3739_v55  ;;  %v3700_v55 = vld [vmem:[#allocation6 + $0x6ac] ss:$16 sps:$4 sm:$0xff]  }
 0x123   :  { %2043 = vmatpush1.bf16.msra.mxu1 %v3650_v56  ;;  %v3703_v56 = vld [vmem:[#allocation6 + $0x6cc] ss:$16 sps:$4 sm:$0xff]  }
 0x124   :  { %2577 = vmatpush1.bf16.msra.mxu0 %v3737_v57  ;;  %2044 = vmatprep.subr.bf16.mxu1 %v3655_v58 }
 0x125   :  { %2578 = vmatprep.subr.bf16.mxu0 %v3742_v59 }
 0x126   :  { %v4140_v0 = vpop.f32.mrb[0].mxu0 }
 0x127   :  { %v4142_v2 = vpop.f32.mrb[1].mxu0  ;;  %2045 = vmatpush1.bf16.msra.mxu1 %v3653_v60 }
 0x128   :  { %v4144_v4 = vpop.f32.mrb[2].mxu0  ;;  %2579 = vmatpush1.bf16.msra.mxu0 %v3740_v61  ;;  %2046 = vmatprep.subr.bf16.mxu1 %v3658_v62  ;;  %v3701_v61 = vld [vmem:[#allocation6 + $0x6c8] ss:$16 sps:$4 sm:$0xff]  }
 0x129   :  { %v4146_v7 = vpop.f32.mrb[3].mxu0  ;;  %2580 = vmatprep.subr.bf16.mxu0 %v3745_v63 }
 0x12b   :  { %2047 = vmatpush1.bf16.msra.mxu1 %v3656_v3  ;;  %v3706_v3 = vld [vmem:[#allocation6 + $0x6ec] ss:$16 sps:$4 sm:$0xff]  }
 0x12c   :  { %2581 = vmatpush1.bf16.msra.mxu0 %v3743_v5  ;;  %2048 = vmatprep.subr.bf16.mxu1 %v3661_v6  ;;  %v3704_v6 = vld [vmem:[#allocation6 + $0x6e8] ss:$16 sps:$4 sm:$0xff]  }
 0x12d   :  { %2582 = vmatprep.subr.bf16.mxu0 %v3748_v8  ;;  %v3707_v8 = vld [vmem:[#allocation6 + $0x708] ss:$16 sps:$4 sm:$0xff]  }
 0x12e   :  { %v4148_v13 = vpop.f32.mrb[4].mxu0 }
 0x12f   :  { %v4150_v14 = vpop.f32.mrb[5].mxu0  ;;  %2049 = vmatpush1.bf16.msra.mxu1 %v3659_v9  ;;  %v3772_v9 = vld [vmem:[#allocation8 + $0xd4] ss:$8 sps:$4 sm:$0xff]  }
 0x130   :  { %v4152_v16 = vpop.f32.mrb[6].mxu0  ;;  %2583 = vmatpush1.bf16.msra.mxu0 %v3746_v10  ;;  %2050 = vmatprep.subr.bf16.mxu1 %v3664_v11  ;;  %v3770_v10 = vld [vmem:[#allocation8 + $0xd0] ss:$8 sps:$4 sm:$0xff]  }
 0x131   :  { %v4154_v20 = vpop.f32.mrb[7].mxu0  ;;  %2584 = vmatprep.subr.bf16.mxu0 %v3751_v12  ;;  %v3710_v11 = vld [vmem:[#allocation6 + $0x728] ss:$16 sps:$4 sm:$0xff]   ;;  %v3775_v12 = vld [vmem:[#allocation8 + $0xe4] ss:$8 sps:$4 sm:$0xff]  }
 0x133   :  { %2051 = vmatpush1.bf16.msra.mxu1 %v3662_v15  ;;  %v3773_v15 = vld [vmem:[#allocation8 + $0xe0] ss:$8 sps:$4 sm:$0xff]  }
 0x134   :  { %2585 = vmatpush1.bf16.msra.mxu0 %v3749_v18  ;;  %2052 = vmatprep.subr.bf16.mxu1 %v3667_v19  ;;  %v3718_v18 = vld [vmem:[#allocation6 + $0x76c] ss:$16 sps:$4 sm:$0xff]  }
 0x135   :  { %2586 = vmatprep.subr.bf16.mxu0 %v3754_v21  ;;  %v3778_v19 = vld [vmem:[#allocation8 + $0xf4] ss:$8 sps:$4 sm:$0xff]   ;;  %v3776_v21 = vld [vmem:[#allocation8 + $0xf0] ss:$8 sps:$4 sm:$0xff]  }
 0x137   :  { %2053 = vmatpush1.bf16.msra.mxu1 %v3665_v22  ;;  %v3716_v22 = vld [vmem:[#allocation6 + $0x768] ss:$16 sps:$4 sm:$0xff]  }
 0x138   :  { %2587 = vmatpush1.bf16.msra.mxu0 %v3752_v23  ;;  %2054 = vmatprep.subr.bf16.mxu1 %v3670_v24  ;;  %v3721_v23 = vld [vmem:[#allocation6 + $0x78c] ss:$16 sps:$4 sm:$0xff]   ;;  %v3719_v24 = vld [vmem:[#allocation6 + $0x788] ss:$16 sps:$4 sm:$0xff]  }
 0x139   :  { %2588 = vmatprep.subr.bf16.mxu0 %v3757_v25  ;;  %v3781_v25 = vld [vmem:[#allocation8 + $0x104] ss:$8 sps:$4 sm:$0xff]  }
 0x13b   :  { %2055 = vmatpush1.bf16.msra.mxu1 %v3668_v26  ;;  %v3724_v26 = vld [vmem:[#allocation6 + $0x7ac] ss:$16 sps:$4 sm:$0xff]  }
 0x13c   :  { %2589 = vmatpush1.bf16.msra.mxu0 %v3755_v27  ;;  %2056 = vmatprep.subr.bf16.mxu1 %v3673_v28  ;;  %v3722_v27 = vld [vmem:[#allocation6 + $0x7a8] ss:$16 sps:$4 sm:$0xff]   ;;  %v3727_v28 = vld [vmem:[#allocation6 + $0x7cc] ss:$16 sps:$4 sm:$0xff]  }
 0x13d   :  { %2590 = vmatprep.subr.bf16.mxu0 %v3760_v29  ;;  %v3725_v29 = vld [vmem:[#allocation6 + $0x7c8] ss:$16 sps:$4 sm:$0xff]  }
 0x13f   :  { %2057 = vmatpush1.bf16.msra.mxu1 %v3671_v30  ;;  %v3730_v30 = vld [vmem:[#allocation6 + $0x7ec] ss:$16 sps:$4 sm:$0xff]  }
 0x140   :  { %2591 = vmatpush1.bf16.msra.mxu0 %v3758_v31  ;;  %2058 = vmatprep.subr.bf16.mxu1 %v3676_v33  ;;  %v3728_v31 = vld [vmem:[#allocation6 + $0x7e8] ss:$16 sps:$4 sm:$0xff]   ;;  %v2120_v33 = vlaneseq }
 0x141   :  { %2592 = vmatprep.subr.bf16.mxu0 %v3763_v34 }
 0x142   :  { %v4172_v34 = vshrl.u32 %v2120_v33, 7 }
 0x143   :  { %2059 = vmatpush1.bf16.msra.mxu1 %v3674_v35 }
 0x144   :  { %2593 = vmatpush1.bf16.msra.mxu0 %v3761_v36  ;;  %2060 = vmatprep.subr.bf16.mxu1 %v3679_v37  ;;  %v4175_v35 = vsub.s32 0, %v4172_v34  ;;  %v4180_v36 = vld [vmem:[%s4235_s4] sm:$0xf]  ;;  %v2126_v37 = vsub.s32 1, %v4172_v34 }
 0x145   :  { %2594 = vmatprep.subr.bf16.mxu0 %v3766_v38 }
 0x146   :  { %v2123_v38 = vrot.slane %v4180_v36, %v4175_v35 }
 0x147   :  { %2061 = vmatpush1.bf16.msra.mxu1 %v3677_v17 }
 0x148   :  { %2595 = vmatpush1.bf16.msra.mxu0 %v3764_v39  ;;  %2062 = vmatprep.subr.bf16.mxu1 %v3682_v40 }
 0x149   :  { %2596 = vmatprep.subr.bf16.mxu0 %v3769_v42 }
 0x14b   :  { %2063 = vmatpush1.bf16.msra.mxu1 %v3680_v43 }
 0x14c   :  { %2597 = vmatpush1.bf16.msra.mxu0 %v3767_v44  ;;  %2075 = vmatprep.subr.bf16.mxu1 %v3685_v1  ;;  %v3827_v44 = vld [vmem:[#allocation9 + $0x40] sm:$0xff]  }
 0x14d   :  { %2598 = vmatprep.subr.bf16.mxu0 %v3772_v9  ;;  %v3828_v1 = vld [vmem:[#allocation9] sm:$0xff]   ;;  %v3782_v9 = vld [vmem:[#allocation8 + $0x110] ss:$8 sps:$4 sm:$0xff]  }
 0x14e   :  { %2065 = vmatmul.mubr.bf16.vlgmr.msra.gmra.mrb[4].mxu1 %v4129_v41  ;;  %v3698_v41 = vld [vmem:[#allocation6 + $0x6a8] ss:$16 sps:$4 sm:$0xff]  }
 0x14f   :  { %2076 = vmatpush1.bf16.msra.mxu1 %v3683_v46  ;;  %2107 = vmatprep.mubr.bf16.mxu1 %v4131_v45  ;;  %v3829_v46 = vld [vmem:[#allocation9 + $0x48] sm:$0xff]  }
 0x150   :  { %2077 = vmatprep.subr.bf16.mxu1 %v3688_v32  ;;  %2599 = vmatpush1.bf16.msra.mxu0 %v3770_v10  ;;  %v3787_v10 = vld [vmem:[#allocation8 + $0x124] ss:$8 sps:$4 sm:$0xff]  }
 0x151   :  { %2600 = vmatprep.subr.bf16.mxu0 %v3775_v12  ;;  %v3790_v12 = vld [vmem:[#allocation8 + $0x134] ss:$8 sps:$4 sm:$0xff]  }
 0x153   :  { %2078 = vmatpush1.bf16.msra.mxu1 %v3686_v47 }
 0x154   :  { %2079 = vmatprep.subr.bf16.mxu1 %v3691_v49  ;;  %2601 = vmatpush1.bf16.msra.mxu0 %v3773_v15  ;;  %v3788_v15 = vld [vmem:[#allocation8 + $0x130] ss:$8 sps:$4 sm:$0xff]  }
 0x155   :  { %2602 = vmatprep.subr.bf16.mxu0 %v3778_v19  ;;  %v3796_v19 = vld [vmem:[#allocation8 + $0x154] ss:$8 sps:$4 sm:$0xff]  }
 0x157   :  { %2080 = vmatpush1.bf16.msra.mxu1 %v3689_v50 }
 0x158   :  { %2081 = vmatprep.subr.bf16.mxu1 %v3694_v51  ;;  %2603 = vmatpush1.bf16.msra.mxu0 %v3776_v21  ;;  %v3794_v21 = vld [vmem:[#allocation8 + $0x150] ss:$8 sps:$4 sm:$0xff]  }
 0x159   :  { %2615 = vmatprep.subr.bf16.mxu0 %v3781_v25  ;;  %v3800_v25 = vld [vmem:[#allocation8 + $0x170] ss:$8 sps:$4 sm:$0xff]  }
 0x15b   :  { %2082 = vmatpush1.bf16.msra.mxu1 %v3692_v54 }
 0x15c   :  { %2083 = vmatprep.subr.bf16.mxu1 %v3697_v52 }
 0x15f   :  { %2084 = vmatpush1.bf16.msra.mxu1 %v3695_v53  ;;  %v3830_v53 = vld [vmem:[#allocation9 + $0x8] sm:$0xff]  }
 0x160   :  { %2085 = vmatprep.subr.bf16.mxu1 %v3700_v55 }
 0x161   :  { %v1808_v57 = vpop.f32.mrb[0].mxu1 }
 0x162   :  { %v4159_v45 = vadd.f32 %v1808_v57, %v4140_v0  ;;  %v1810_v58 = vpop.f32.mrb[1].mxu1  ;;  %v3709_v0 = vld [vmem:[#allocation6 + $0x70c] ss:$16 sps:$4 sm:$0xff]  }
 0x163   :  { %v4162_v59 = vadd.f32 %v1810_v58, %v4142_v2  ;;  %v1812_v60 = vpop.f32.mrb[2].mxu1  ;;  %2086 = vmatpush1.bf16.msra.mxu1 %v3698_v41  ;;  %v3712_v2 = vld [vmem:[#allocation6 + $0x72c] ss:$16 sps:$4 sm:$0xff]  }
 0x164   :  { %v4165_v62 = vadd.f32 %v1812_v60, %v4144_v4  ;;  %v1814_v63 = vpop.f32.mrb[3].mxu1  ;;  %2087 = vmatprep.subr.bf16.mxu1 %v3703_v56  ;;  %v3715_v4 = vld [vmem:[#allocation6 + $0x74c] ss:$16 sps:$4 sm:$0xff]   ;;  %v3831_v56 = vld [vmem:[#allocation9 + $0x50] sm:$0xff]  }
 0x165   :  { %v4168_v5 = vadd.f32 %v1814_v63, %v4146_v7  ;;  %v3713_v7 = vld [vmem:[#allocation6 + $0x748] ss:$16 sps:$4 sm:$0xff]   ;;  %v3832_v60 = vld [vmem:[#allocation9 + $0x10] sm:$0xff]  }
 0x167   :  { %2088 = vmatpush1.bf16.msra.mxu1 %v3701_v61 }
 0x168   :  { %2089 = vmatprep.subr.bf16.mxu1 %v3706_v3  ;;  %v3833_v3 = vld [vmem:[#allocation9 + $0x58] sm:$0xff]  }
 0x16b   :  { %2090 = vmatpush1.bf16.msra.mxu1 %v3704_v6  ;;  %v3779_v6 = vld [vmem:[#allocation8 + $0x100] ss:$8 sps:$4 sm:$0xff]  }
 0x16c   :  { %2091 = vmatprep.subr.bf16.mxu1 %v3709_v0  ;;  %v3784_v0 = vld [vmem:[#allocation8 + $0x114] ss:$8 sps:$4 sm:$0xff]  }
 0x16f   :  { %2092 = vmatpush1.bf16.msra.mxu1 %v3707_v8  ;;  %v3834_v8 = vld [vmem:[#allocation9 + $0x18] sm:$0xff]  }
 0x170   :  { %2093 = vmatprep.subr.bf16.mxu1 %v3712_v2  ;;  %v3835_v2 = vld [vmem:[#allocation9 + $0x60] sm:$0xff]  }
 0x173   :  { %2094 = vmatpush1.bf16.msra.mxu1 %v3710_v11  ;;  %v3836_v11 = vld [vmem:[#allocation9 + $0x20] sm:$0xff]  }
 0x174   :  { %2095 = vmatprep.subr.bf16.mxu1 %v3715_v4  ;;  %v3785_v4 = vld [vmem:[#allocation8 + $0x120] ss:$8 sps:$4 sm:$0xff]  }
 0x177   :  { %2096 = vmatpush1.bf16.msra.mxu1 %v3713_v7  ;;  %v3793_v7 = vld [vmem:[#allocation8 + $0x144] ss:$8 sps:$4 sm:$0xff]  }
 0x178   :  { %2097 = vmatprep.subr.bf16.mxu1 %v3718_v18  ;;  %v3791_v18 = vld [vmem:[#allocation8 + $0x140] ss:$8 sps:$4 sm:$0xff]  }
 0x17b   :  { %2098 = vmatpush1.bf16.msra.mxu1 %v3716_v22  ;;  %v3799_v22 = vld [vmem:[#allocation8 + $0x164] ss:$8 sps:$4 sm:$0xff]  }
 0x17c   :  { %2099 = vmatprep.subr.bf16.mxu1 %v3721_v23  ;;  %v3797_v23 = vld [vmem:[#allocation8 + $0x160] ss:$8 sps:$4 sm:$0xff]  }
 0x17f   :  { %2100 = vmatpush1.bf16.msra.mxu1 %v3719_v24  ;;  %v3802_v24 = vld [vmem:[#allocation8 + $0x174] ss:$8 sps:$4 sm:$0xff]  }
 0x180   :  { %2101 = vmatprep.subr.bf16.mxu1 %v3724_v26  ;;  %v3805_v26 = vld [vmem:[#allocation8 + $0x184] ss:$8 sps:$4 sm:$0xff]  }
 0x183   :  { %2102 = vmatpush1.bf16.msra.mxu1 %v3722_v27  ;;  %v3803_v27 = vld [vmem:[#allocation8 + $0x180] ss:$8 sps:$4 sm:$0xff]  }
 0x184   :  { %2103 = vmatprep.subr.bf16.mxu1 %v3727_v28  ;;  %v3808_v28 = vld [vmem:[#allocation8 + $0x194] ss:$8 sps:$4 sm:$0xff]  }
 0x187   :  { %2104 = vmatpush1.bf16.msra.mxu1 %v3725_v29  ;;  %v3806_v29 = vld [vmem:[#allocation8 + $0x190] ss:$8 sps:$4 sm:$0xff]  }
 0x188   :  { %2105 = vmatprep.subr.bf16.mxu1 %v3730_v30  ;;  %v3811_v30 = vld [vmem:[#allocation8 + $0x1a4] ss:$8 sps:$4 sm:$0xff]  }
 0x18b   :  { %2106 = vmatpush1.bf16.msra.mxu1 %v3728_v31  ;;  %v3809_v31 = vld [vmem:[#allocation8 + $0x1a0] ss:$8 sps:$4 sm:$0xff]  }
 0x18c   :  { %3268 = vmatprep.subr.bf16.mxu1 %v3827_v44  ;;  %v3821_v44 = vld [vmem:[#allocation8 + $0x1e0] ss:$8 sps:$4 sm:$0xff]  }
 0x18e   :  { %2108 = vmatmul.mubr.bf16.vlgmr.msra.gmra.mrb[4].mxu1 %v4137_v48  ;;  %v2127_v48 = vrot.slane %v4180_v36, %v2126_v37 }
 0x18f   :  { %3269 = vmatpush3.bf16.msra.mxu1 %v3828_v1  ;;  %v3826_v1 = vld [vmem:[#allocation8 + $0x1f4] ss:$8 sps:$4 sm:$0xff]  }
 0x190   :  { %3270 = vmatprep.subr.bf16.mxu1 %v3829_v46  ;;  %v3824_v46 = vld [vmem:[#allocation8 + $0x1f0] ss:$8 sps:$4 sm:$0xff]  }
 0x193   :  { %3271 = vmatpush3.bf16.msra.mxu1 %v3830_v53 }
 0x194   :  { %3272 = vmatprep.subr.bf16.mxu1 %v3831_v56 }
 0x197   :  { %3273 = vmatpush3.bf16.msra.mxu1 %v3832_v60 }
 0x198   :  { %3274 = vmatprep.subr.bf16.mxu1 %v3833_v3 }
 0x19b   :  { %3275 = vmatpush3.bf16.msra.mxu1 %v3834_v8  ;;  %v3839_v8 = vld [vmem:[#allocation9 + $0x70] sm:$0xff]  }
 0x19c   :  { %3276 = vmatprep.subr.bf16.mxu1 %v3835_v2  ;;  %v3840_v2 = vld [vmem:[#allocation9 + $0x30] sm:$0xff]  }
 0x19f   :  { %3277 = vmatpush3.bf16.msra.mxu1 %v3836_v11  ;;  %v2240_v11 = vld [vmem:[%s4237_s6] sm:$0x3] }
 0x1ee   :  { %v1937_v17 = vpop.f32.mrb[8].mxu0 }
 0x1ef   :  { %v3291_v39 = vadd.f32 %v1937_v17, %v4159_v45  ;;  %v1939_v40 = vpop.f32.mrb[9].mxu0  ;;  %v3812_v17 = vld [vmem:[#allocation8 + $0x1b0] ss:$8 sps:$4 sm:$0xff]  }
 0x1f0   :  { %v3293_v42 = vadd.f32 %v1939_v40, %v4162_v59  ;;  %v1941_v43 = vpop.f32.mrb[10].mxu0  ;;  %v3820_v40 = vld [vmem:[#allocation8 + $0x1d4] ss:$8 sps:$4 sm:$0xff]  }
 0x1f1   :  { %v2140_v32 = vadd.f32 %v3291_v39, %v2123_v38  ;;  %v3295_v47 = vadd.f32 %v1941_v43, %v4165_v62  ;;  %v1943_v49 = vpop.f32.mrb[11].mxu0  ;;  %v3815_v39 = vld [vmem:[#allocation8 + $0x1c0] ss:$8 sps:$4 sm:$0xff]   ;;  %v3823_v43 = vld [vmem:[#allocation8 + $0x1e4] ss:$8 sps:$4 sm:$0xff]  }
 0x1f2   :  { %v2141_v50 = vadd.f32 %v3293_v42, %v2127_v48  ;;  %v3297_v51 = vadd.f32 %v1943_v49, %v4168_v5  ;;  %v3818_v42 = vld [vmem:[#allocation8 + $0x1d0] ss:$8 sps:$4 sm:$0xff]  }
 0x1f3   :  { %v2156_v54 = vmul.f32 0.2, %v2140_v32  ;;  %v2144_v52 = vadd.f32 %v3295_v47, %v2123_v38  ;;  %vm2148_vm2 = vcmp.gt.f32.partialorder %v2140_v32, 0.0  ;;  %v3814_v38 = vld [vmem:[#allocation8 + $0x1b4] ss:$8 sps:$4 sm:$0xff]   ;;  %v2134_v47 = vsub.s32 3, %v4172_v34 }
 0x1f4   :  { %v2157_v55 = vmul.f32 0.2, %v2141_v50  ;;  %v2145_v41 = vadd.f32 %v3297_v51, %v2127_v48  ;;  %vm2149_vm3 = vcmp.gt.f32.partialorder %v2141_v50, 0.0  ;;  %v3817_v48 = vld [vmem:[#allocation8 + $0x1c4] ss:$8 sps:$4 sm:$0xff]  }
 0x1f5   :  { %vm2152_vm4 = vcmp.gt.f32.partialorder %v2144_v52, 0.0  ;;  %v2160_v57 = vmul.f32 0.2, %v2144_v52  ;;  %v2164_v58 = vsel %vm2148_vm2, %v2140_v32, %v2156_v54  ;;  %v2130_v32 = vsub.s32 2, %v4172_v34 }
 0x1f6   :  { %vm2153_vm5 = vcmp.gt.f32.partialorder %v2145_v41, 0.0  ;;  %v2161_v45 = vmul.f32 0.2, %v2145_v41  ;;  %v2165_v61 = vsel %vm2149_vm3, %v2141_v50, %v2157_v55  ;;  %v2135_v51 = vrot.slane %v4180_v36, %v2134_v47 }
 0x1f7   :  { %v2168_v59 = vsel %vm2152_vm4, %v2144_v52, %v2160_v57  ;;  %v2131_v49 = vrot.slane %v4180_v36, %v2130_v32  ;;  %vm2901_vm2 = vcmask 130112   ;;  %vm2904_vm3 = vcmask 122880  }
 0x1f8   :  { %v2169_v62 = vsel %vm2153_vm5, %v2145_v41, %v2161_v45  ;;  %v2172_v63 = vpack.c.bf16 %v2168_v59, %v2164_v58 }
 0x1f9   :  { %v2173_v5 = vpack.c.bf16 %v2169_v62, %v2165_v61 }
 0x1fb   :  { %2604 = vmatprep.mubr.bf16.mxu0 %v2173_v5 }
 0x1fc   :  { %2605 = vmatmul.mubr.bf16.vlgmr.msra.gmra.mrb[12].mxu0 %v2172_v63 }
 0x1fd   :  { %2616 = vmatpush1.bf16.msra.mxu0 %v3779_v6 }
 0x1fe   :  { %2617 = vmatprep.subr.bf16.mxu0 %v3784_v0  ;;  %v3837_v0 = vld [vmem:[#allocation9 + $0x68] sm:$0xff]  }
 0x1ff   :  { %3278 = vmatprep.subr.bf16.mxu1 %v3837_v0 }
 0x201   :  { %2618 = vmatpush1.bf16.msra.mxu0 %v3782_v9  ;;  %v3841_v9 = vld [vmem:[#allocation9 + $0x78] sm:$0xff]  }
 0x202   :  { %2619 = vmatprep.subr.bf16.mxu0 %v3787_v10  ;;  %v3842_v10 = vld [vmem:[#allocation9 + $0x38] sm:$0xff]  }
 0x205   :  { %2620 = vmatpush1.bf16.msra.mxu0 %v3785_v4  ;;  %v2245_v4 = vrot.slane %v2240_v11, %v4175_v35 }
 0x206   :  { %2621 = vmatprep.subr.bf16.mxu0 %v3790_v12  ;;  %v2249_v12 = vrot.slane %v2240_v11, %v2126_v37 }
 0x209   :  { %2622 = vmatpush1.bf16.msra.mxu0 %v3788_v15 }
 0x20a   :  { %2623 = vmatprep.subr.bf16.mxu0 %v3793_v7 }
 0x20d   :  { %2624 = vmatpush1.bf16.msra.mxu0 %v3791_v18 }
 0x20e   :  { %2625 = vmatprep.subr.bf16.mxu0 %v3796_v19 }
 0x211   :  { %2626 = vmatpush1.bf16.msra.mxu0 %v3794_v21 }
 0x212   :  { %2627 = vmatprep.subr.bf16.mxu0 %v3799_v22 }
 0x215   :  { %2628 = vmatpush1.bf16.msra.mxu0 %v3797_v23 }
 0x216   :  { %2629 = vmatprep.subr.bf16.mxu0 %v3802_v24 }
 0x219   :  { %2630 = vmatpush1.bf16.msra.mxu0 %v3800_v25 }
 0x21a   :  { %2631 = vmatprep.subr.bf16.mxu0 %v3805_v26 }
 0x21d   :  { %2632 = vmatpush1.bf16.msra.mxu0 %v3803_v27 }
 0x21e   :  { %2633 = vmatprep.subr.bf16.mxu0 %v3808_v28 }
 0x221   :  { %2634 = vmatpush1.bf16.msra.mxu0 %v3806_v29 }
 0x222   :  { %2635 = vmatprep.subr.bf16.mxu0 %v3811_v30 }
 0x225   :  { %2636 = vmatpush1.bf16.msra.mxu0 %v3809_v31 }
 0x226   :  { %2637 = vmatprep.subr.bf16.mxu0 %v3814_v38 }
 0x229   :  { %2638 = vmatpush1.bf16.msra.mxu0 %v3812_v17 }
 0x22a   :  { %2639 = vmatprep.subr.bf16.mxu0 %v3817_v48  ;;  %v2854_v48 = vld [vmem:[%s4240_s9] sm:$0x1] }
 0x22d   :  { %2640 = vmatpush1.bf16.msra.mxu0 %v3815_v39 }
 0x22e   :  { %2641 = vmatprep.subr.bf16.mxu0 %v3820_v40  ;;  %v3251_v40 = vld [vmem:[%s4239_s8] ss:$0 sm:$0xff] }
 0x231   :  { %2642 = vmatpush1.bf16.msra.mxu0 %v3818_v42 }
 0x232   :  { %2643 = vmatprep.subr.bf16.mxu0 %v3823_v43  ;;  %v2855_v43 = vunpack.c.l.bf16 %v2854_v48 }
 0x235   :  { %2644 = vmatpush1.bf16.msra.mxu0 %v3821_v44 }
 0x236   :  { %2645 = vmatprep.subr.bf16.mxu0 %v3826_v1 }
 0x239   :  { %2646 = vmatpush1.bf16.msra.mxu0 %v3824_v46 }
 0x261   :  { %v2109_v50 = vpop.f32.mrb[4].mxu1 }
 0x262   :  { %v3298_v54 = vadd.f32 %v2109_v50, %v4148_v13  ;;  %v2111_v52 = vpop.f32.mrb[5].mxu1 }
 0x263   :  { %v3299_v53 = vadd.f32 %v2111_v52, %v4150_v14  ;;  %v2113_v55 = vpop.f32.mrb[6].mxu1 }
 0x264   :  { %v2142_v41 = vadd.f32 %v3298_v54, %v2131_v49  ;;  %v3300_v56 = vadd.f32 %v2113_v55, %v4152_v16  ;;  %v2115_v57 = vpop.f32.mrb[7].mxu1 }
 0x265   :  { %v2143_v45 = vadd.f32 %v3299_v53, %v2135_v51  ;;  %v3301_v58 = vadd.f32 %v2115_v57, %v4154_v20  ;;  %v3838_v20 = vld [vmem:[#allocation9 + $0x28] sm:$0xff]  }
 0x266   :  { %v2158_v59 = vmul.f32 0.2, %v2142_v41  ;;  %v2146_v60 = vadd.f32 %v3300_v56, %v2131_v49  ;;  %vm2150_vm6 = vcmp.gt.f32.partialorder %v2142_v41, 0.0  ;;  %3279 = vmatpush3.bf16.msra.mxu1 %v3838_v20  ;;  %v2859_v49 = vrot.slane %v2855_v43, %v4175_v35 }
 0x267   :  { %v2159_v61 = vmul.f32 0.2, %v2143_v45  ;;  %v2147_v62 = vadd.f32 %v3301_v58, %v2135_v51  ;;  %vm2151_vm7 = vcmp.gt.f32.partialorder %v2143_v45, 0.0  ;;  %3280 = vmatprep.subr.bf16.mxu1 %v3839_v8  ;;  %v2867_v56 = vstv %s4241_s10  ;;  %s3981_s10 = smov [#allocation11]  }
 0x268   :  { %vm2154_vm8 = vcmp.gt.f32.partialorder %v2146_v60, 0.0  ;;  %v2162_v36 = vmul.f32 0.2, %v2146_v60  ;;  %v2166_v63 = vsel %vm2150_vm6, %v2142_v41, %v2158_v59  ;;  %s2912_s22 = sshll.u32 %s3981_s10, 4  ;;  %s2913_s22 = int_to_ptr.vmem [resolvable:$true] %s2912_s22 }
 0x269   :  { %vm2155_vm9 = vcmp.gt.f32.partialorder %v2147_v62, 0.0  ;;  %v2163_v13 = vmul.f32 0.2, %v2147_v62  ;;  %v2167_v3 = vsel %vm2151_vm7, %v2143_v45, %v2159_v61  ;;  %s3939_s2 = scalar_lea.vmem %s2913_s22, 16  ;;  %s3943_s23 = scalar_lea.vmem %s2913_s22, 32 }
 0x26a   :  { %v2170_v14 = vsel %vm2154_vm8, %v2146_v60, %v2162_v36  ;;  %3281 = vmatpush3.bf16.msra.mxu1 %v3840_v2  ;;  %p3940_p4 = scmp.ne.s32.totalorder %s2913_s22, %s3939_s2  ;;  %p3944_p5 = scmp.lt.s32.totalorder %s2913_s22, %s2913_s22 }
 0x26b   :  { %v2171_v5 = vsel %vm2155_vm9, %v2147_v62, %v2163_v13  ;;  %v2174_v6 = vpack.c.bf16 %v2170_v14, %v2166_v63  ;;  %3282 = vmatprep.subr.bf16.mxu1 %v3841_v9  ;;  %p3945_p6 = scmp.lt.s32.totalorder %s3943_s23, %s3939_s2 }
 0x26c   :  { %v2175_v16 = vpack.c.bf16 %v2171_v5, %v2167_v3 }
 0x26d   :  { %p3946_p7 = por %p3945_p6, %p3944_p5 }
 0x26e   :  { %2647 = vmatprep.mubr.bf16.mxu0 %v2175_v16  ;;  %3283 = vmatpush3.bf16.msra.mxu1 %v3842_v10 }
 0x26f   :  { %2648 = vmatmul.mubr.bf16.vlgmr.msra.gmra.mrb[12].mxu0 %v2174_v6  ;;  %v2891_v6 = vand.u32 127, %v2120_v33  ;;  %p3947_p8 = pnand %p3946_p7, %p3940_p4 }
 0x271   :  { %v2896_v0 = vadd.s32 4294967288, %v2891_v6  ;;  %v2894_v2 = vsub.s32 %v2891_v6, %v4172_v34 }
 0x273   :  { %v2899_v9 = vsub.s32 %v2896_v0, %v4172_v34 }
 0x342   :  { %v2649_v15 = vpop.f32.mrb[12].mxu0 }
 0x343   :  { %v3302_v7 = vadd.f32 %v2649_v15, %v2245_v4  ;;  %v2651_v18 = vpop.f32.mrb[13].mxu0 }
 0x344   :  { %v3303_v19 = vadd.f32 %v2651_v18, %v2249_v12  ;;  %v2653_v21 = vpop.f32.mrb[14].mxu0 }
 0x345   :  { %v2662_v22 = vmul.f32 0.2, %v3302_v7  ;;  %v3304_v23 = vadd.f32 %v2653_v21, %v2245_v4  ;;  %v2655_v24 = vpop.f32.mrb[15].mxu0  ;;  %vm2658_vm10 = vcmp.gt.f32.partialorder %v3302_v7, 0.0 }
 0x346   :  { %v2663_v25 = vmul.f32 0.2, %v3303_v19  ;;  %v3305_v26 = vadd.f32 %v2655_v24, %v2249_v12  ;;  %vm2659_vm11 = vcmp.gt.f32.partialorder %v3303_v19, 0.0 }
 0x347   :  { %vm2660_vm12 = vcmp.gt.f32.partialorder %v3304_v23, 0.0  ;;  %v2664_v27 = vmul.f32 0.2, %v3304_v23  ;;  %v2666_v29 = vsel %vm2658_vm10, %v3302_v7, %v2662_v22 }
 0x348   :  { %vm2661_vm13 = vcmp.gt.f32.partialorder %v3305_v26, 0.0  ;;  %v2665_v28 = vmul.f32 0.2, %v3305_v26  ;;  %v2667_v37 = vsel %vm2659_vm11, %v3303_v19, %v2663_v25 }
 0x349   :  { %v2668_v30 = vsel %vm2660_vm12, %v3304_v23, %v2664_v27 }
 0x34a   :  { %v2670_v31 = vpack.c.bf16 %v2668_v30, %v2666_v29  ;;  %v2669_v38 = vsel %vm2661_vm13, %v3305_v26, %v2665_v28 }
 0x34b   :  { %v2671_v17 = vpack.c.bf16 %v2669_v38, %v2667_v37 }
 0x34d   :  { %2839 = vmatprep.mubr.bf16.mxu1 %v2671_v17 }
 0x34e   :  { %2840 = vmatmul.mubr.bf16.vlgmr.msra.gmra.mrb[8].mxu1 %v2670_v31 }
 0x421   :  { %v3284_v39 = vpop.f32.mrb[8].mxu1 }
 0x422   :  { %v3285_v42 = vpop.f32.mrb[9].mxu1 }
 0x423   :  { %v3286_v44 = vadd.f32 %v3285_v42, %v3284_v39  ;;  %v3287_v1 = vpop.f32.mrb[10].mxu1 }
 0x424   :  { %v3288_v46 = vpop.f32.mrb[11].mxu1 }
 0x425   :  { %v2842_v32 = vadd.f32 %v3286_v44, %v3251_v40  ;;  %v3289_v47 = vadd.f32 %v3288_v46, %v3287_v1 }
 0x427   :  { %v2845_v50 = vadd.f32 %v3289_v47, %v3251_v40  ;;  %vm2848_vm14 = vcmp.gt.f32.partialorder %v2842_v32, 0.0  ;;  %v2850_v51 = vmul.f32 0.2, %v2842_v32 }
 0x429   :  { %v2852_v54 = vsel %vm2848_vm14, %v2842_v32, %v2850_v51  ;;  %vm2849_vm15 = vcmp.gt.f32.partialorder %v2845_v50, 0.0  ;;  %v2851_v52 = vmul.f32 0.2, %v2845_v50 }
 0x42a   :  { %v2860_v53 = vmul.f32 %v2859_v49, %v2852_v54 }
 0x42b   :  { %v2853_v55 = vsel %vm2849_vm15, %v2845_v50, %v2851_v52 }
 0x42c   :  { %2862 = vadd.xlane.f32.xlu0 %v2860_v53  ;;  %v2861_v41 = vmul.f32 %v2859_v49, %v2853_v55 }
 0x430   :  { %2864 = vadd.xlane.f32.xlu0 %v2861_v41 }
 0x4b9   :  { %v2863_v57 = vpop.xlane.xlu0 %2862 }
 0x4ba   :  { %v2868_v45 = vadd.f32 %v2867_v56, %v2863_v57 }
 0x4bc   :  { %v2870_v58 = vand.u32 2147483647, %v2868_v45  ;;  %vm2882_vm0 = vcmp.ge.f32.partialorder %v2868_v45, 0.0 }
 0x4bd   :  { %v2865_v59 = vpop.xlane.xlu0 %2864 }
 0x4be   :  { %v2872_v35 = vsub.f32 0.0, %v2870_v58  ;;  %v2869_v60 = vadd.f32 %v2867_v56, %v2865_v59 }
 0x4c0   :  { %v2874_v61 = vmul.f32 1.442695, %v2872_v35  ;;  %v2871_v62 = vand.u32 2147483647, %v2869_v60  ;;  %vm2883_vm1 = vcmp.ge.f32.partialorder %v2869_v60, 0.0 }
 0x4c2   :  { %3843 = vpow2.f32 %v2874_v61  ;;  %v2873_v36 = vsub.f32 0.0, %v2871_v62 }
 0x4c4   :  { %v2876_v13 = vmul.f32 1.442695, %v2873_v36 }
 0x4c6   :  { %3845 = vpow2.f32 %v2876_v13 }
 0x4cc   :  { %v3844_v63 = vpop.eup %3843 }
 0x4cd   :  { %v2878_v14 = vadd.f32 1.0, %v3844_v63 }
 0x4cf   :  { %3847 = vrcp.f32 %v2878_v14 }
 0x4d0   :  { %v3846_v3 = vpop.eup %3845 }
 0x4d1   :  { %v2879_v5 = vadd.f32 1.0, %v3846_v3 }
 0x4d3   :  { %3849 = vrcp.f32 %v2879_v5 }
 0x4d9   :  { %v3848_v16 = vpop.eup %3847 }
 0x4da   :  { %v2884_v20 = vmul.f32 %v3848_v16, %v3844_v63 }
 0x4dc   :  { %v2886_v10 = vsel %vm2882_vm0, %v3848_v16, %v2884_v20 }
 0x4dd   :  { %v3850_v8 = vpop.eup %3849  ;;  %v2895_v12 = vrot.slane %v2886_v10, %v2894_v2 }
 0x4de   :  { %v2885_v11 = vmul.f32 %v3850_v8, %v3846_v3 }
 0x4e0   :  { %v2887_v4 = vsel %vm2883_vm1, %v3850_v8, %v2885_v11 }
 0x4e1   :  { %v2900_v15 = vrot.slane %v2887_v4, %v2899_v9 }
 0x4e3   :  { %v2902_v33 = vsel %vm2901_vm2, %v2900_v15, %v2895_v12 }
 0x4e4   :  { %2905 = vst.msk [vmem:[#allocation11] sm:$0x1] %vm2904_vm3, %v2902_v33 }
 0x4e5   :  { %3950 = shalt.err (!%p3947_p8)
}
 0x4e6   :  { %s3951_s27 = scalar_lea.hbm %s4242_s11, 16 }
 0x4e7   :  { %p3952_p9 = scmp.ne.s32.totalorder %s4242_s11, %s3951_s27  ;;  %p3955_p10 = scmp.lt.u32.totalorder %s3951_s27, %s4242_s11 }
 0x4e9   :  { %p3957_p11 = pnand %p3955_p10, %p3952_p9 }
 0x4eb   :  { %3960 = shalt.err (!%p3957_p11)
}
 0x4ec   :  { %2915 = dma.vmem_to_hbm [thread:$0]  %s2913_s22, 16, %s4242_s11, [#allocation5]  }
 0x4ed   :  { %3967 = dma.done.wait [#allocation5], 16  }
 0x4ee   :  { %3968 = vsyncadd [#allocation5], 4294967280 }
 0x4ef   :  { %2919 = vsyncpa [#allocation4], 1 }
 0x4f0   :  { %2920 = vsyncpa [#allocation7], 1 }
 0x4f1   :  { %2921 = vsyncpa [#allocation10], 1 }
 0x4f2   :  { %2922 = vsyncpa [#allocation5], 1 }

</bundles_post_ra>
